<compile_context>
chip_gen: v7x
topology: tpu7x:2x2x1
jax: 0.10.0
libtpu: 0.0.40
codegen_flags: <defaults>
</compile_context>

<pallas_src>
import jax
import jax.numpy as jnp
from jax.experimental import pallas as pl
from jax.experimental.pallas import tpu as pltpu

IN_FEATURES = 768
OUT_FEATURES = 8
GRID_SIZE = 4
SPLINE_ORDER = 3
N_COEF = GRID_SIZE + SPLINE_ORDER          # 7 spline coefficients per input
N_GRID = GRID_SIZE + 2 * SPLINE_ORDER + 1  # 11 knots per input feature
# one reciprocal row per (level k, knot m): rl_k[m] = 1 / (g[m+k] - g[m])
N_RL = sum(N_GRID - k for k in range(1, SPLINE_ORDER + 1))  # 10 + 9 + 8 = 27


def kan_linear_kernel(x_ref, grid_ref, rl_ref, w_ref, out_ref, acc_ref):
    """KANLinear forward on one (batch tile, input-feature chunk).

    x_ref:    (TB, CK)                 input feature chunk
    grid_ref: (N_GRID, CK)             transposed spline knots (f32)
    rl_ref:   (N_RL, CK)               1/(g[m+k]-g[m]) stacked over k = 1..order (f32)
    w_ref:    (1+N_COEF, OUT, CK)      [base_weight ; scaled_spline[...,c]] lane-dense, bf16
    out_ref:  (TB, OUT)                f32 output (written on last K chunk)
    acc_ref:  (TB, OUT)                f32 accumulator scratch across K chunks
    """
    kc = pl.program_id(1)

    x = x_ref[...]                                         # (TB, CK) f32

    def knot(j):                                           # (1, CK), broadcasts over TB
        return grid_ref[j:j + 1, :]

    # x - knot_j, reused by both recursion branches (11 lane-aligned 2-D arrays)
    d = [x - knot(j) for j in range(N_GRID)]

    # order-0 bases as step-function differences (knots are sorted):
    #   B0_j = [x >= g_j] - [x >= g_{j+1}]  ==  [g_j <= x < g_{j+1}]
    ge = [(d[j] >= 0.0).astype(x.dtype) for j in range(N_GRID)]
    bases = [ge[j] - ge[j + 1] for j in range(N_GRID - 1)]

    # Cox-de Boor recursion with one shared reciprocal table per level:
    #   t[m]      = rl_k[m] * bases[m]             (shared by left & right branch)
    #   bases'[j] = d[j] * t[j] - d[j+k+1] * t[j+1]
    off = 0
    for k in range(1, SPLINE_ORDER + 1):
        n_old = N_GRID - k
        t = [rl_ref[off + m:off + m + 1, :] * bases[m] for m in range(n_old)]
        bases = [d[j] * t[j] - d[j + k + 1] * t[j + 1] for j in range(n_old - 1)]
        off += n_old
    # bases: list of N_COEF (TB, CK) arrays

    # base path activation (EUP handles the sigmoid)
    silu_x = x * jax.nn.sigmoid(x)

    # 8 small MXU contractions, bf16 operands, f32 accumulation; no feats slab.
    feats = [silu_x] + bases                               # 1 + N_COEF arrays
    dn = (((1,), (1,)), ((), ()))                          # contract lane dims
    acc = jax.lax.dot_general(feats[0].astype(jnp.bfloat16), w_ref[0],
                              dn, preferred_element_type=jnp.float32)
    for c in range(1, 1 + N_COEF):
        acc = acc + jax.lax.dot_general(feats[c].astype(jnp.bfloat16), w_ref[c],
                                        dn, preferred_element_type=jnp.float32)

    @pl.when(kc == 0)
    def _():
        acc_ref[...] = jnp.zeros_like(acc_ref)

    acc_ref[...] += acc

    @pl.when(kc == pl.num_programs(1) - 1)
    def _():
        out_ref[...] = acc_ref[...].astype(out_ref.dtype)


def _round_up(v, m):
    return (v + m - 1) // m * m


def _default_batch_tile():
    """Bigger batch tiles on 128 MiB-VMEM parts; stay at 256 for v7x (64 MiB)."""
    try:
        kind = jax.devices()[0].device_kind.lower()
    except Exception:
        return 256
    if "v5" in kind or "v6" in kind:
        return 512
    return 256


def kan_linear(x, grid_t, recips, w_fused, *, tb=None, ck=256):
    """Tiled KANLinear forward. `x`: (B, IN_FEATURES) float32."""
    b, in_f = x.shape
    assert in_f == IN_FEATURES
    assert IN_FEATURES % ck == 0 and ck % 128 == 0

    if tb is None:
        tb = _default_batch_tile()
    tb = max(8, _round_up(tb, 8))

    # Prefer >= 2 batch tiles (v7x megacore sharding) while keeping tiles a
    # multiple of 8 sublanes.
    b8 = _round_up(b, 8)
    half = max(8, _round_up(-(-b8 // 2), 8))
    tb_eff = min(tb, half)
    b_pad = _round_up(b8, tb_eff)
    x_p = x if b_pad == b else jnp.pad(x, ((0, b_pad - b), (0, 0)))

    out = pl.pallas_call(
        kan_linear_kernel,
        out_shape=jax.ShapeDtypeStruct((b_pad, OUT_FEATURES), jnp.float32),
        grid_spec=pltpu.PrefetchScalarGridSpec(
            num_scalar_prefetch=0,
            grid=(b_pad // tb_eff, IN_FEATURES // ck),
            in_specs=[
                pl.BlockSpec((tb_eff, ck), lambda i, kc: (i, kc)),
                pl.BlockSpec((N_GRID, ck), lambda i, kc: (0, kc)),
                pl.BlockSpec((N_RL, ck), lambda i, kc: (0, kc)),
                pl.BlockSpec((1 + N_COEF, OUT_FEATURES, ck),
                             lambda i, kc: (0, 0, kc)),
            ],
            out_specs=pl.BlockSpec((tb_eff, OUT_FEATURES), lambda i, kc: (i, 0)),
            scratch_shapes=[pltpu.VMEM((tb_eff, OUT_FEATURES), jnp.float32)],
        ),
        compiler_params=pltpu.CompilerParams(
            dimension_semantics=("parallel", "arbitrary"),
            vmem_limit_bytes=48 * 1024 * 1024,
        ),
    )(x_p, grid_t, recips, w_fused)
    return out[:b]


def make_params(key):
    """Deterministic parameters matching KANLinear(768, 8) shapes/layouts."""
    k_base, k_spline, k_scaler = jax.random.split(key, 3)
    # grid: arange(-order, grid_size+order+1) * h, h = 1/grid_size; transposed (N_GRID, IN)
    h = 1.0 / GRID_SIZE
    grid_1d = jnp.arange(-SPLINE_ORDER, GRID_SIZE + SPLINE_ORDER + 1,
                         dtype=jnp.float32) * h
    grid_t = jnp.broadcast_to(grid_1d[:, None], (N_GRID, IN_FEATURES))

    bound = 1.0 / jnp.sqrt(jnp.float32(IN_FEATURES))
    base_weight = jax.random.uniform(k_base, (OUT_FEATURES, IN_FEATURES),
                                     jnp.float32, -bound, bound)
    spline_weight = jax.random.uniform(k_spline,
                                       (OUT_FEATURES, IN_FEATURES, N_COEF),
                                       jnp.float32, -0.01, 0.01)
    spline_scaler = jax.random.uniform(k_scaler, (OUT_FEATURES, IN_FEATURES),
                                       jnp.float32, -bound, bound)
    scaled_spline = spline_weight * spline_scaler[:, :, None]   # (OUT, IN, COEF)
    return grid_t, base_weight, scaled_spline


def prepare_kernel_params(grid_t, base_weight, scaled_spline):
    """Host-side precompute: shared Cox-de Boor reciprocals + lane-dense fused weight."""
    # One reciprocal table per level: rl_k[m] = 1/(g[m+k]-g[m]); note the
    # recursion's right-branch denominator is just rl_k shifted by one row.
    rl = [1.0 / (grid_t[k:] - grid_t[:-k]) for k in range(1, SPLINE_ORDER + 1)]
    recips = jnp.concatenate(rl, axis=0)                        # (N_RL, IN) f32

    # Fused weight, lane-dense on IN: slice 0 = base path, slice c+1 = spline coef c.
    w_fused = jnp.concatenate(
        [base_weight[None, :, :], jnp.transpose(scaled_spline, (2, 0, 1))],
        axis=0).astype(jnp.bfloat16)                            # (1+N_COEF, OUT, IN)
    return recips, w_fused


def reference(x, grid_t, base_weight, scaled_spline):
    """Pure-JAX f32 reference of the KANLinear forward (original formulation)."""
    base = jnp.dot(x * jax.nn.sigmoid(x), base_weight.T)
    xb = x[:, None, :]
    g = grid_t
    bases = jnp.logical_and(xb >= g[None, :-1, :], xb < g[None, 1:, :]).astype(x.dtype)
    for k in range(1, SPLINE_ORDER + 1):
        left = ((xb - g[None, :-(k + 1), :])
                / (g[None, k:-1, :] - g[None, :-(k + 1), :])) * bases[:, :-1, :]
        right = ((g[None, k + 1:, :] - xb)
                 / (g[None, k + 1:, :] - g[None, 1:-k, :])) * bases[:, 1:, :]
        bases = left + right
    spline = jnp.einsum('bci,oic->bo', bases, scaled_spline)
    return base + spline


if __name__ == "__main__":
    key = jax.random.PRNGKey(0)
    k_x, k_p, k_x2 = jax.random.split(key, 3)

    grid_t, base_weight, scaled_spline = make_params(k_p)
    recips, w_fused = prepare_kernel_params(grid_t, base_weight, scaled_spline)

    # 1) tiny batch (single minimal tile, padded to 8 rows)
    batch = 2
    x = jax.random.uniform(k_x, (batch, IN_FEATURES), jnp.float32, 0.0, 1.0)
    out = jax.block_until_ready(kan_linear(x, grid_t, recips, w_fused))
    ref = reference(x, grid_t, base_weight, scaled_spline)
    assert out.shape == (batch, OUT_FEATURES)
    assert jnp.allclose(out, ref, atol=1e-2, rtol=1e-2), (out, ref)

    # 2) multi-tile + padded-remainder path (grid over the batch and K axes)
    batch2 = 37
    x2 = jax.random.uniform(k_x2, (batch2, IN_FEATURES), jnp.float32, 0.0, 1.0)
    out2 = jax.block_until_ready(
        kan_linear(x2, grid_t, recips, w_fused, tb=16))
    ref2 = reference(x2, grid_t, base_weight, scaled_spline)
    assert out2.shape == (batch2, OUT_FEATURES)
    assert jnp.allclose(out2, ref2, atol=1e-2, rtol=1e-2), (out2, ref2)

    print("KERNEL_OK")
</pallas_src>

<mosaic_0001>
module attributes {stable_mosaic.version = 11 : i64} {
  func.func @kan_linear_kernel(%arg0: i32, %arg1: i32, %arg2: memref<8x256xf32, #tpu.memory_space<vmem>>, %arg3: memref<11x256xf32, #tpu.memory_space<vmem>>, %arg4: memref<27x256xf32, #tpu.memory_space<vmem>>, %arg5: memref<8x8x256xbf16, #tpu.memory_space<vmem>>, %arg6: memref<8x8xf32, #tpu.memory_space<vmem>>, %arg7: memref<8x8xf32, #tpu.memory_space<vmem>>) attributes {dimension_semantics = [#tpu.dimension_semantics<parallel>, #tpu.dimension_semantics<arbitrary>], iteration_bounds = array<i64: 1, 3>, scalar_prefetch = 0 : i64, scratch_operands = 1 : i64, tpu.core_type = #tpu.core_type<tc>, window_params = [{transform_indices = @transform_0, window_bounds = array<i64: 8, 256>}, {transform_indices = @transform_1, window_bounds = array<i64: 11, 256>}, {transform_indices = @transform_2, window_bounds = array<i64: 27, 256>}, {transform_indices = @transform_3, window_bounds = array<i64: 8, 8, 256>}, {transform_indices = @transform_4, window_bounds = array<i64: 8, 8>}]} {
    %c0 = arith.constant 0 : index
    %c0_0 = arith.constant 0 : index
    %0 = vector.load %arg2[%c0, %c0_0] : memref<8x256xf32, #tpu.memory_space<vmem>>, vector<8x256xf32>
    %c0_1 = arith.constant 0 : index
    %c0_2 = arith.constant 0 : index
    %1 = vector.load %arg3[%c0_1, %c0_2] : memref<11x256xf32, #tpu.memory_space<vmem>>, vector<1x256xf32>
    %2 = vector.broadcast %1 : vector<1x256xf32> to vector<8x256xf32>
    %3 = arith.subf %0, %2 : vector<8x256xf32>
    %c1 = arith.constant 1 : index
    %c0_3 = arith.constant 0 : index
    %4 = vector.load %arg3[%c1, %c0_3] : memref<11x256xf32, #tpu.memory_space<vmem>>, vector<1x256xf32>
    %5 = vector.broadcast %4 : vector<1x256xf32> to vector<8x256xf32>
    %6 = arith.subf %0, %5 : vector<8x256xf32>
    %c2 = arith.constant 2 : index
    %c0_4 = arith.constant 0 : index
    %7 = vector.load %arg3[%c2, %c0_4] : memref<11x256xf32, #tpu.memory_space<vmem>>, vector<1x256xf32>
    %8 = vector.broadcast %7 : vector<1x256xf32> to vector<8x256xf32>
    %9 = arith.subf %0, %8 : vector<8x256xf32>
    %c3 = arith.constant 3 : index
    %c0_5 = arith.constant 0 : index
    %10 = vector.load %arg3[%c3, %c0_5] : memref<11x256xf32, #tpu.memory_space<vmem>>, vector<1x256xf32>
    %11 = vector.broadcast %10 : vector<1x256xf32> to vector<8x256xf32>
    %12 = arith.subf %0, %11 : vector<8x256xf32>
    %c4 = arith.constant 4 : index
    %c0_6 = arith.constant 0 : index
    %13 = vector.load %arg3[%c4, %c0_6] : memref<11x256xf32, #tpu.memory_space<vmem>>, vector<1x256xf32>
    %14 = vector.broadcast %13 : vector<1x256xf32> to vector<8x256xf32>
    %15 = arith.subf %0, %14 : vector<8x256xf32>
    %c5 = arith.constant 5 : index
    %c0_7 = arith.constant 0 : index
    %16 = vector.load %arg3[%c5, %c0_7] : memref<11x256xf32, #tpu.memory_space<vmem>>, vector<1x256xf32>
    %17 = vector.broadcast %16 : vector<1x256xf32> to vector<8x256xf32>
    %18 = arith.subf %0, %17 : vector<8x256xf32>
    %c6 = arith.constant 6 : index
    %c0_8 = arith.constant 0 : index
    %19 = vector.load %arg3[%c6, %c0_8] : memref<11x256xf32, #tpu.memory_space<vmem>>, vector<1x256xf32>
    %20 = vector.broadcast %19 : vector<1x256xf32> to vector<8x256xf32>
    %21 = arith.subf %0, %20 : vector<8x256xf32>
    %c7 = arith.constant 7 : index
    %c0_9 = arith.constant 0 : index
    %22 = vector.load %arg3[%c7, %c0_9] : memref<11x256xf32, #tpu.memory_space<vmem>>, vector<1x256xf32>
    %23 = vector.broadcast %22 : vector<1x256xf32> to vector<8x256xf32>
    %24 = arith.subf %0, %23 : vector<8x256xf32>
    %c8 = arith.constant 8 : index
    %c0_10 = arith.constant 0 : index
    %25 = vector.load %arg3[%c8, %c0_10] : memref<11x256xf32, #tpu.memory_space<vmem>>, vector<1x256xf32>
    %26 = vector.broadcast %25 : vector<1x256xf32> to vector<8x256xf32>
    %27 = arith.subf %0, %26 : vector<8x256xf32>
    %c9 = arith.constant 9 : index
    %c0_11 = arith.constant 0 : index
    %28 = vector.load %arg3[%c9, %c0_11] : memref<11x256xf32, #tpu.memory_space<vmem>>, vector<1x256xf32>
    %29 = vector.broadcast %28 : vector<1x256xf32> to vector<8x256xf32>
    %30 = arith.subf %0, %29 : vector<8x256xf32>
    %c10 = arith.constant 10 : index
    %c0_12 = arith.constant 0 : index
    %31 = vector.load %arg3[%c10, %c0_12] : memref<11x256xf32, #tpu.memory_space<vmem>>, vector<1x256xf32>
    %32 = vector.broadcast %31 : vector<1x256xf32> to vector<8x256xf32>
    %33 = arith.subf %0, %32 : vector<8x256xf32>
    %cst = arith.constant 0.000000e+00 : f32
    %34 = vector.broadcast %cst : f32 to vector<8x256xf32>
    %35 = arith.cmpf oge, %3, %34 : vector<8x256xf32>
    %36 = arith.extui %35 : vector<8x256xi1> to vector<8x256xi32>
    %37 = arith.sitofp %36 : vector<8x256xi32> to vector<8x256xf32>
    %cst_13 = arith.constant 0.000000e+00 : f32
    %38 = vector.broadcast %cst_13 : f32 to vector<8x256xf32>
    %39 = arith.cmpf oge, %6, %38 : vector<8x256xf32>
    %40 = arith.extui %39 : vector<8x256xi1> to vector<8x256xi32>
    %41 = arith.sitofp %40 : vector<8x256xi32> to vector<8x256xf32>
    %cst_14 = arith.constant 0.000000e+00 : f32
    %42 = vector.broadcast %cst_14 : f32 to vector<8x256xf32>
    %43 = arith.cmpf oge, %9, %42 : vector<8x256xf32>
    %44 = arith.extui %43 : vector<8x256xi1> to vector<8x256xi32>
    %45 = arith.sitofp %44 : vector<8x256xi32> to vector<8x256xf32>
    %cst_15 = arith.constant 0.000000e+00 : f32
    %46 = vector.broadcast %cst_15 : f32 to vector<8x256xf32>
    %47 = arith.cmpf oge, %12, %46 : vector<8x256xf32>
    %48 = arith.extui %47 : vector<8x256xi1> to vector<8x256xi32>
    %49 = arith.sitofp %48 : vector<8x256xi32> to vector<8x256xf32>
    %cst_16 = arith.constant 0.000000e+00 : f32
    %50 = vector.broadcast %cst_16 : f32 to vector<8x256xf32>
    %51 = arith.cmpf oge, %15, %50 : vector<8x256xf32>
    %52 = arith.extui %51 : vector<8x256xi1> to vector<8x256xi32>
    %53 = arith.sitofp %52 : vector<8x256xi32> to vector<8x256xf32>
    %cst_17 = arith.constant 0.000000e+00 : f32
    %54 = vector.broadcast %cst_17 : f32 to vector<8x256xf32>
    %55 = arith.cmpf oge, %18, %54 : vector<8x256xf32>
    %56 = arith.extui %55 : vector<8x256xi1> to vector<8x256xi32>
    %57 = arith.sitofp %56 : vector<8x256xi32> to vector<8x256xf32>
    %cst_18 = arith.constant 0.000000e+00 : f32
    %58 = vector.broadcast %cst_18 : f32 to vector<8x256xf32>
    %59 = arith.cmpf oge, %21, %58 : vector<8x256xf32>
    %60 = arith.extui %59 : vector<8x256xi1> to vector<8x256xi32>
    %61 = arith.sitofp %60 : vector<8x256xi32> to vector<8x256xf32>
    %cst_19 = arith.constant 0.000000e+00 : f32
    %62 = vector.broadcast %cst_19 : f32 to vector<8x256xf32>
    %63 = arith.cmpf oge, %24, %62 : vector<8x256xf32>
    %64 = arith.extui %63 : vector<8x256xi1> to vector<8x256xi32>
    %65 = arith.sitofp %64 : vector<8x256xi32> to vector<8x256xf32>
    %cst_20 = arith.constant 0.000000e+00 : f32
    %66 = vector.broadcast %cst_20 : f32 to vector<8x256xf32>
    %67 = arith.cmpf oge, %27, %66 : vector<8x256xf32>
    %68 = arith.extui %67 : vector<8x256xi1> to vector<8x256xi32>
    %69 = arith.sitofp %68 : vector<8x256xi32> to vector<8x256xf32>
    %cst_21 = arith.constant 0.000000e+00 : f32
    %70 = vector.broadcast %cst_21 : f32 to vector<8x256xf32>
    %71 = arith.cmpf oge, %30, %70 : vector<8x256xf32>
    %72 = arith.extui %71 : vector<8x256xi1> to vector<8x256xi32>
    %73 = arith.sitofp %72 : vector<8x256xi32> to vector<8x256xf32>
    %cst_22 = arith.constant 0.000000e+00 : f32
    %74 = vector.broadcast %cst_22 : f32 to vector<8x256xf32>
    %75 = arith.cmpf oge, %33, %74 : vector<8x256xf32>
    %76 = arith.extui %75 : vector<8x256xi1> to vector<8x256xi32>
    %77 = arith.sitofp %76 : vector<8x256xi32> to vector<8x256xf32>
    %78 = arith.subf %37, %41 : vector<8x256xf32>
    %79 = arith.subf %41, %45 : vector<8x256xf32>
    %80 = arith.subf %45, %49 : vector<8x256xf32>
    %81 = arith.subf %49, %53 : vector<8x256xf32>
    %82 = arith.subf %53, %57 : vector<8x256xf32>
    %83 = arith.subf %57, %61 : vector<8x256xf32>
    %84 = arith.subf %61, %65 : vector<8x256xf32>
    %85 = arith.subf %65, %69 : vector<8x256xf32>
    %86 = arith.subf %69, %73 : vector<8x256xf32>
    %87 = arith.subf %73, %77 : vector<8x256xf32>
    %c0_23 = arith.constant 0 : index
    %c0_24 = arith.constant 0 : index
    %88 = vector.load %arg4[%c0_23, %c0_24] : memref<27x256xf32, #tpu.memory_space<vmem>>, vector<1x256xf32>
    %89 = vector.broadcast %88 : vector<1x256xf32> to vector<8x256xf32>
    %90 = arith.mulf %89, %78 : vector<8x256xf32>
    %c1_25 = arith.constant 1 : index
    %c0_26 = arith.constant 0 : index
    %91 = vector.load %arg4[%c1_25, %c0_26] : memref<27x256xf32, #tpu.memory_space<vmem>>, vector<1x256xf32>
    %92 = vector.broadcast %91 : vector<1x256xf32> to vector<8x256xf32>
    %93 = arith.mulf %92, %79 : vector<8x256xf32>
    %c2_27 = arith.constant 2 : index
    %c0_28 = arith.constant 0 : index
    %94 = vector.load %arg4[%c2_27, %c0_28] : memref<27x256xf32, #tpu.memory_space<vmem>>, vector<1x256xf32>
    %95 = vector.broadcast %94 : vector<1x256xf32> to vector<8x256xf32>
    %96 = arith.mulf %95, %80 : vector<8x256xf32>
    %c3_29 = arith.constant 3 : index
    %c0_30 = arith.constant 0 : index
    %97 = vector.load %arg4[%c3_29, %c0_30] : memref<27x256xf32, #tpu.memory_space<vmem>>, vector<1x256xf32>
    %98 = vector.broadcast %97 : vector<1x256xf32> to vector<8x256xf32>
    %99 = arith.mulf %98, %81 : vector<8x256xf32>
    %c4_31 = arith.constant 4 : index
    %c0_32 = arith.constant 0 : index
    %100 = vector.load %arg4[%c4_31, %c0_32] : memref<27x256xf32, #tpu.memory_space<vmem>>, vector<1x256xf32>
    %101 = vector.broadcast %100 : vector<1x256xf32> to vector<8x256xf32>
    %102 = arith.mulf %101, %82 : vector<8x256xf32>
    %c5_33 = arith.constant 5 : index
    %c0_34 = arith.constant 0 : index
    %103 = vector.load %arg4[%c5_33, %c0_34] : memref<27x256xf32, #tpu.memory_space<vmem>>, vector<1x256xf32>
    %104 = vector.broadcast %103 : vector<1x256xf32> to vector<8x256xf32>
    %105 = arith.mulf %104, %83 : vector<8x256xf32>
    %c6_35 = arith.constant 6 : index
    %c0_36 = arith.constant 0 : index
    %106 = vector.load %arg4[%c6_35, %c0_36] : memref<27x256xf32, #tpu.memory_space<vmem>>, vector<1x256xf32>
    %107 = vector.broadcast %106 : vector<1x256xf32> to vector<8x256xf32>
    %108 = arith.mulf %107, %84 : vector<8x256xf32>
    %c7_37 = arith.constant 7 : index
    %c0_38 = arith.constant 0 : index
    %109 = vector.load %arg4[%c7_37, %c0_38] : memref<27x256xf32, #tpu.memory_space<vmem>>, vector<1x256xf32>
    %110 = vector.broadcast %109 : vector<1x256xf32> to vector<8x256xf32>
    %111 = arith.mulf %110, %85 : vector<8x256xf32>
    %c8_39 = arith.constant 8 : index
    %c0_40 = arith.constant 0 : index
    %112 = vector.load %arg4[%c8_39, %c0_40] : memref<27x256xf32, #tpu.memory_space<vmem>>, vector<1x256xf32>
    %113 = vector.broadcast %112 : vector<1x256xf32> to vector<8x256xf32>
    %114 = arith.mulf %113, %86 : vector<8x256xf32>
    %c9_41 = arith.constant 9 : index
    %c0_42 = arith.constant 0 : index
    %115 = vector.load %arg4[%c9_41, %c0_42] : memref<27x256xf32, #tpu.memory_space<vmem>>, vector<1x256xf32>
    %116 = vector.broadcast %115 : vector<1x256xf32> to vector<8x256xf32>
    %117 = arith.mulf %116, %87 : vector<8x256xf32>
    %118 = arith.mulf %3, %90 : vector<8x256xf32>
    %119 = arith.mulf %9, %93 : vector<8x256xf32>
    %120 = arith.subf %118, %119 : vector<8x256xf32>
    %121 = arith.mulf %6, %93 : vector<8x256xf32>
    %122 = arith.mulf %12, %96 : vector<8x256xf32>
    %123 = arith.subf %121, %122 : vector<8x256xf32>
    %124 = arith.mulf %9, %96 : vector<8x256xf32>
    %125 = arith.mulf %15, %99 : vector<8x256xf32>
    %126 = arith.subf %124, %125 : vector<8x256xf32>
    %127 = arith.mulf %12, %99 : vector<8x256xf32>
    %128 = arith.mulf %18, %102 : vector<8x256xf32>
    %129 = arith.subf %127, %128 : vector<8x256xf32>
    %130 = arith.mulf %15, %102 : vector<8x256xf32>
    %131 = arith.mulf %21, %105 : vector<8x256xf32>
    %132 = arith.subf %130, %131 : vector<8x256xf32>
    %133 = arith.mulf %18, %105 : vector<8x256xf32>
    %134 = arith.mulf %24, %108 : vector<8x256xf32>
    %135 = arith.subf %133, %134 : vector<8x256xf32>
    %136 = arith.mulf %21, %108 : vector<8x256xf32>
    %137 = arith.mulf %27, %111 : vector<8x256xf32>
    %138 = arith.subf %136, %137 : vector<8x256xf32>
    %139 = arith.mulf %24, %111 : vector<8x256xf32>
    %140 = arith.mulf %30, %114 : vector<8x256xf32>
    %141 = arith.subf %139, %140 : vector<8x256xf32>
    %142 = arith.mulf %27, %114 : vector<8x256xf32>
    %143 = arith.mulf %33, %117 : vector<8x256xf32>
    %144 = arith.subf %142, %143 : vector<8x256xf32>
    %c10_43 = arith.constant 10 : index
    %c0_44 = arith.constant 0 : index
    %145 = vector.load %arg4[%c10_43, %c0_44] : memref<27x256xf32, #tpu.memory_space<vmem>>, vector<1x256xf32>
    %146 = vector.broadcast %145 : vector<1x256xf32> to vector<8x256xf32>
    %147 = arith.mulf %146, %120 : vector<8x256xf32>
    %c11 = arith.constant 11 : index
    %c0_45 = arith.constant 0 : index
    %148 = vector.load %arg4[%c11, %c0_45] : memref<27x256xf32, #tpu.memory_space<vmem>>, vector<1x256xf32>
    %149 = vector.broadcast %148 : vector<1x256xf32> to vector<8x256xf32>
    %150 = arith.mulf %149, %123 : vector<8x256xf32>
    %c12 = arith.constant 12 : index
    %c0_46 = arith.constant 0 : index
    %151 = vector.load %arg4[%c12, %c0_46] : memref<27x256xf32, #tpu.memory_space<vmem>>, vector<1x256xf32>
    %152 = vector.broadcast %151 : vector<1x256xf32> to vector<8x256xf32>
    %153 = arith.mulf %152, %126 : vector<8x256xf32>
    %c13 = arith.constant 13 : index
    %c0_47 = arith.constant 0 : index
    %154 = vector.load %arg4[%c13, %c0_47] : memref<27x256xf32, #tpu.memory_space<vmem>>, vector<1x256xf32>
    %155 = vector.broadcast %154 : vector<1x256xf32> to vector<8x256xf32>
    %156 = arith.mulf %155, %129 : vector<8x256xf32>
    %c14 = arith.constant 14 : index
    %c0_48 = arith.constant 0 : index
    %157 = vector.load %arg4[%c14, %c0_48] : memref<27x256xf32, #tpu.memory_space<vmem>>, vector<1x256xf32>
    %158 = vector.broadcast %157 : vector<1x256xf32> to vector<8x256xf32>
    %159 = arith.mulf %158, %132 : vector<8x256xf32>
    %c15 = arith.constant 15 : index
    %c0_49 = arith.constant 0 : index
    %160 = vector.load %arg4[%c15, %c0_49] : memref<27x256xf32, #tpu.memory_space<vmem>>, vector<1x256xf32>
    %161 = vector.broadcast %160 : vector<1x256xf32> to vector<8x256xf32>
    %162 = arith.mulf %161, %135 : vector<8x256xf32>
    %c16 = arith.constant 16 : index
    %c0_50 = arith.constant 0 : index
    %163 = vector.load %arg4[%c16, %c0_50] : memref<27x256xf32, #tpu.memory_space<vmem>>, vector<1x256xf32>
    %164 = vector.broadcast %163 : vector<1x256xf32> to vector<8x256xf32>
    %165 = arith.mulf %164, %138 : vector<8x256xf32>
    %c17 = arith.constant 17 : index
    %c0_51 = arith.constant 0 : index
    %166 = vector.load %arg4[%c17, %c0_51] : memref<27x256xf32, #tpu.memory_space<vmem>>, vector<1x256xf32>
    %167 = vector.broadcast %166 : vector<1x256xf32> to vector<8x256xf32>
    %168 = arith.mulf %167, %141 : vector<8x256xf32>
    %c18 = arith.constant 18 : index
    %c0_52 = arith.constant 0 : index
    %169 = vector.load %arg4[%c18, %c0_52] : memref<27x256xf32, #tpu.memory_space<vmem>>, vector<1x256xf32>
    %170 = vector.broadcast %169 : vector<1x256xf32> to vector<8x256xf32>
    %171 = arith.mulf %170, %144 : vector<8x256xf32>
    %172 = arith.mulf %3, %147 : vector<8x256xf32>
    %173 = arith.mulf %12, %150 : vector<8x256xf32>
    %174 = arith.subf %172, %173 : vector<8x256xf32>
    %175 = arith.mulf %6, %150 : vector<8x256xf32>
    %176 = arith.mulf %15, %153 : vector<8x256xf32>
    %177 = arith.subf %175, %176 : vector<8x256xf32>
    %178 = arith.mulf %9, %153 : vector<8x256xf32>
    %179 = arith.mulf %18, %156 : vector<8x256xf32>
    %180 = arith.subf %178, %179 : vector<8x256xf32>
    %181 = arith.mulf %12, %156 : vector<8x256xf32>
    %182 = arith.mulf %21, %159 : vector<8x256xf32>
    %183 = arith.subf %181, %182 : vector<8x256xf32>
    %184 = arith.mulf %15, %159 : vector<8x256xf32>
    %185 = arith.mulf %24, %162 : vector<8x256xf32>
    %186 = arith.subf %184, %185 : vector<8x256xf32>
    %187 = arith.mulf %18, %162 : vector<8x256xf32>
    %188 = arith.mulf %27, %165 : vector<8x256xf32>
    %189 = arith.subf %187, %188 : vector<8x256xf32>
    %190 = arith.mulf %21, %165 : vector<8x256xf32>
    %191 = arith.mulf %30, %168 : vector<8x256xf32>
    %192 = arith.subf %190, %191 : vector<8x256xf32>
    %193 = arith.mulf %24, %168 : vector<8x256xf32>
    %194 = arith.mulf %33, %171 : vector<8x256xf32>
    %195 = arith.subf %193, %194 : vector<8x256xf32>
    %c19 = arith.constant 19 : index
    %c0_53 = arith.constant 0 : index
    %196 = vector.load %arg4[%c19, %c0_53] : memref<27x256xf32, #tpu.memory_space<vmem>>, vector<1x256xf32>
    %197 = vector.broadcast %196 : vector<1x256xf32> to vector<8x256xf32>
    %198 = arith.mulf %197, %174 : vector<8x256xf32>
    %c20 = arith.constant 20 : index
    %c0_54 = arith.constant 0 : index
    %199 = vector.load %arg4[%c20, %c0_54] : memref<27x256xf32, #tpu.memory_space<vmem>>, vector<1x256xf32>
    %200 = vector.broadcast %199 : vector<1x256xf32> to vector<8x256xf32>
    %201 = arith.mulf %200, %177 : vector<8x256xf32>
    %c21 = arith.constant 21 : index
    %c0_55 = arith.constant 0 : index
    %202 = vector.load %arg4[%c21, %c0_55] : memref<27x256xf32, #tpu.memory_space<vmem>>, vector<1x256xf32>
    %203 = vector.broadcast %202 : vector<1x256xf32> to vector<8x256xf32>
    %204 = arith.mulf %203, %180 : vector<8x256xf32>
    %c22 = arith.constant 22 : index
    %c0_56 = arith.constant 0 : index
    %205 = vector.load %arg4[%c22, %c0_56] : memref<27x256xf32, #tpu.memory_space<vmem>>, vector<1x256xf32>
    %206 = vector.broadcast %205 : vector<1x256xf32> to vector<8x256xf32>
    %207 = arith.mulf %206, %183 : vector<8x256xf32>
    %c23 = arith.constant 23 : index
    %c0_57 = arith.constant 0 : index
    %208 = vector.load %arg4[%c23, %c0_57] : memref<27x256xf32, #tpu.memory_space<vmem>>, vector<1x256xf32>
    %209 = vector.broadcast %208 : vector<1x256xf32> to vector<8x256xf32>
    %210 = arith.mulf %209, %186 : vector<8x256xf32>
    %c24 = arith.constant 24 : index
    %c0_58 = arith.constant 0 : index
    %211 = vector.load %arg4[%c24, %c0_58] : memref<27x256xf32, #tpu.memory_space<vmem>>, vector<1x256xf32>
    %212 = vector.broadcast %211 : vector<1x256xf32> to vector<8x256xf32>
    %213 = arith.mulf %212, %189 : vector<8x256xf32>
    %c25 = arith.constant 25 : index
    %c0_59 = arith.constant 0 : index
    %214 = vector.load %arg4[%c25, %c0_59] : memref<27x256xf32, #tpu.memory_space<vmem>>, vector<1x256xf32>
    %215 = vector.broadcast %214 : vector<1x256xf32> to vector<8x256xf32>
    %216 = arith.mulf %215, %192 : vector<8x256xf32>
    %c26 = arith.constant 26 : index
    %c0_60 = arith.constant 0 : index
    %217 = vector.load %arg4[%c26, %c0_60] : memref<27x256xf32, #tpu.memory_space<vmem>>, vector<1x256xf32>
    %218 = vector.broadcast %217 : vector<1x256xf32> to vector<8x256xf32>
    %219 = arith.mulf %218, %195 : vector<8x256xf32>
    %220 = arith.mulf %3, %198 : vector<8x256xf32>
    %221 = arith.mulf %15, %201 : vector<8x256xf32>
    %222 = arith.subf %220, %221 : vector<8x256xf32>
    %223 = arith.mulf %6, %201 : vector<8x256xf32>
    %224 = arith.mulf %18, %204 : vector<8x256xf32>
    %225 = arith.subf %223, %224 : vector<8x256xf32>
    %226 = arith.mulf %9, %204 : vector<8x256xf32>
    %227 = arith.mulf %21, %207 : vector<8x256xf32>
    %228 = arith.subf %226, %227 : vector<8x256xf32>
    %229 = arith.mulf %12, %207 : vector<8x256xf32>
    %230 = arith.mulf %24, %210 : vector<8x256xf32>
    %231 = arith.subf %229, %230 : vector<8x256xf32>
    %232 = arith.mulf %15, %210 : vector<8x256xf32>
    %233 = arith.mulf %27, %213 : vector<8x256xf32>
    %234 = arith.subf %232, %233 : vector<8x256xf32>
    %235 = arith.mulf %18, %213 : vector<8x256xf32>
    %236 = arith.mulf %30, %216 : vector<8x256xf32>
    %237 = arith.subf %235, %236 : vector<8x256xf32>
    %238 = arith.mulf %21, %216 : vector<8x256xf32>
    %239 = arith.mulf %33, %219 : vector<8x256xf32>
    %240 = arith.subf %238, %239 : vector<8x256xf32>
    %241 = arith.negf %0 : vector<8x256xf32>
    %242 = math.exp %241 : vector<8x256xf32>
    %cst_61 = arith.constant 1.000000e+00 : f32
    %243 = vector.broadcast %cst_61 : f32 to vector<8x256xf32>
    %244 = arith.addf %243, %242 : vector<8x256xf32>
    %245 = arith.divf %243, %244 : vector<8x256xf32>
    %246 = arith.mulf %0, %245 : vector<8x256xf32>
    %247 = arith.truncf %246 : vector<8x256xf32> to vector<8x256xbf16>
    %c0_62 = arith.constant 0 : index
    %c0_63 = arith.constant 0 : index
    %c0_64 = arith.constant 0 : index
    %248 = vector.load %arg5[%c0_62, %c0_63, %c0_64] : memref<8x8x256xbf16, #tpu.memory_space<vmem>>, vector<1x8x256xbf16>
    %249 = vector.shape_cast %248 : vector<1x8x256xbf16> to vector<8x256xbf16>
    %cst_65 = arith.constant dense<0.000000e+00> : vector<8x8xf32>
    %250 = tpu.matmul %247, %249, %cst_65 {dimension_numbers = #tpu.dot_dimension_numbers<[1], [1], [0], [0], [0, 0, 1, 0], [], []>} : vector<8x256xbf16>, vector<8x256xbf16>, vector<8x8xf32> -> vector<8x8xf32>
    %251 = arith.truncf %222 : vector<8x256xf32> to vector<8x256xbf16>
    %c1_66 = arith.constant 1 : index
    %c0_67 = arith.constant 0 : index
    %c0_68 = arith.constant 0 : index
    %252 = vector.load %arg5[%c1_66, %c0_67, %c0_68] : memref<8x8x256xbf16, #tpu.memory_space<vmem>>, vector<1x8x256xbf16>
    %253 = vector.shape_cast %252 : vector<1x8x256xbf16> to vector<8x256xbf16>
    %cst_69 = arith.constant dense<0.000000e+00> : vector<8x8xf32>
    %254 = tpu.matmul %251, %253, %cst_69 {dimension_numbers = #tpu.dot_dimension_numbers<[1], [1], [0], [0], [0, 0, 1, 0], [], []>} : vector<8x256xbf16>, vector<8x256xbf16>, vector<8x8xf32> -> vector<8x8xf32>
    %255 = arith.addf %250, %254 : vector<8x8xf32>
    %256 = arith.truncf %225 : vector<8x256xf32> to vector<8x256xbf16>
    %c2_70 = arith.constant 2 : index
    %c0_71 = arith.constant 0 : index
    %c0_72 = arith.constant 0 : index
    %257 = vector.load %arg5[%c2_70, %c0_71, %c0_72] : memref<8x8x256xbf16, #tpu.memory_space<vmem>>, vector<1x8x256xbf16>
    %258 = vector.shape_cast %257 : vector<1x8x256xbf16> to vector<8x256xbf16>
    %cst_73 = arith.constant dense<0.000000e+00> : vector<8x8xf32>
    %259 = tpu.matmul %256, %258, %cst_73 {dimension_numbers = #tpu.dot_dimension_numbers<[1], [1], [0], [0], [0, 0, 1, 0], [], []>} : vector<8x256xbf16>, vector<8x256xbf16>, vector<8x8xf32> -> vector<8x8xf32>
    %260 = arith.addf %255, %259 : vector<8x8xf32>
    %261 = arith.truncf %228 : vector<8x256xf32> to vector<8x256xbf16>
    %c3_74 = arith.constant 3 : index
    %c0_75 = arith.constant 0 : index
    %c0_76 = arith.constant 0 : index
    %262 = vector.load %arg5[%c3_74, %c0_75, %c0_76] : memref<8x8x256xbf16, #tpu.memory_space<vmem>>, vector<1x8x256xbf16>
    %263 = vector.shape_cast %262 : vector<1x8x256xbf16> to vector<8x256xbf16>
    %cst_77 = arith.constant dense<0.000000e+00> : vector<8x8xf32>
    %264 = tpu.matmul %261, %263, %cst_77 {dimension_numbers = #tpu.dot_dimension_numbers<[1], [1], [0], [0], [0, 0, 1, 0], [], []>} : vector<8x256xbf16>, vector<8x256xbf16>, vector<8x8xf32> -> vector<8x8xf32>
    %265 = arith.addf %260, %264 : vector<8x8xf32>
    %266 = arith.truncf %231 : vector<8x256xf32> to vector<8x256xbf16>
    %c4_78 = arith.constant 4 : index
    %c0_79 = arith.constant 0 : index
    %c0_80 = arith.constant 0 : index
    %267 = vector.load %arg5[%c4_78, %c0_79, %c0_80] : memref<8x8x256xbf16, #tpu.memory_space<vmem>>, vector<1x8x256xbf16>
    %268 = vector.shape_cast %267 : vector<1x8x256xbf16> to vector<8x256xbf16>
    %cst_81 = arith.constant dense<0.000000e+00> : vector<8x8xf32>
    %269 = tpu.matmul %266, %268, %cst_81 {dimension_numbers = #tpu.dot_dimension_numbers<[1], [1], [0], [0], [0, 0, 1, 0], [], []>} : vector<8x256xbf16>, vector<8x256xbf16>, vector<8x8xf32> -> vector<8x8xf32>
    %270 = arith.addf %265, %269 : vector<8x8xf32>
    %271 = arith.truncf %234 : vector<8x256xf32> to vector<8x256xbf16>
    %c5_82 = arith.constant 5 : index
    %c0_83 = arith.constant 0 : index
    %c0_84 = arith.constant 0 : index
    %272 = vector.load %arg5[%c5_82, %c0_83, %c0_84] : memref<8x8x256xbf16, #tpu.memory_space<vmem>>, vector<1x8x256xbf16>
    %273 = vector.shape_cast %272 : vector<1x8x256xbf16> to vector<8x256xbf16>
    %cst_85 = arith.constant dense<0.000000e+00> : vector<8x8xf32>
    %274 = tpu.matmul %271, %273, %cst_85 {dimension_numbers = #tpu.dot_dimension_numbers<[1], [1], [0], [0], [0, 0, 1, 0], [], []>} : vector<8x256xbf16>, vector<8x256xbf16>, vector<8x8xf32> -> vector<8x8xf32>
    %275 = arith.addf %270, %274 : vector<8x8xf32>
    %276 = arith.truncf %237 : vector<8x256xf32> to vector<8x256xbf16>
    %c6_86 = arith.constant 6 : index
    %c0_87 = arith.constant 0 : index
    %c0_88 = arith.constant 0 : index
    %277 = vector.load %arg5[%c6_86, %c0_87, %c0_88] : memref<8x8x256xbf16, #tpu.memory_space<vmem>>, vector<1x8x256xbf16>
    %278 = vector.shape_cast %277 : vector<1x8x256xbf16> to vector<8x256xbf16>
    %cst_89 = arith.constant dense<0.000000e+00> : vector<8x8xf32>
    %279 = tpu.matmul %276, %278, %cst_89 {dimension_numbers = #tpu.dot_dimension_numbers<[1], [1], [0], [0], [0, 0, 1, 0], [], []>} : vector<8x256xbf16>, vector<8x256xbf16>, vector<8x8xf32> -> vector<8x8xf32>
    %280 = arith.addf %275, %279 : vector<8x8xf32>
    %281 = arith.truncf %240 : vector<8x256xf32> to vector<8x256xbf16>
    %c7_90 = arith.constant 7 : index
    %c0_91 = arith.constant 0 : index
    %c0_92 = arith.constant 0 : index
    %282 = vector.load %arg5[%c7_90, %c0_91, %c0_92] : memref<8x8x256xbf16, #tpu.memory_space<vmem>>, vector<1x8x256xbf16>
    %283 = vector.shape_cast %282 : vector<1x8x256xbf16> to vector<8x256xbf16>
    %cst_93 = arith.constant dense<0.000000e+00> : vector<8x8xf32>
    %284 = tpu.matmul %281, %283, %cst_93 {dimension_numbers = #tpu.dot_dimension_numbers<[1], [1], [0], [0], [0, 0, 1, 0], [], []>} : vector<8x256xbf16>, vector<8x256xbf16>, vector<8x8xf32> -> vector<8x8xf32>
    %285 = arith.addf %280, %284 : vector<8x8xf32>
    %c0_i32 = arith.constant 0 : i32
    %286 = arith.cmpi eq, %arg1, %c0_i32 : i32
    %287 = arith.extui %286 : i1 to i32
    %c0_i32_94 = arith.constant 0 : i32
    %288 = arith.cmpi ne, %287, %c0_i32_94 : i32
    scf.if %288 {
      %cst_100 = arith.constant 0.000000e+00 : f32
      %295 = vector.broadcast %cst_100 : f32 to vector<8x8xf32>
      %c0_101 = arith.constant 0 : index
      %c0_102 = arith.constant 0 : index
      %296 = vector.load %arg7[%c0_101, %c0_102] : memref<8x8xf32, #tpu.memory_space<vmem>>, vector<8x8xf32>
      tpu.vector_store %arg7[%c0_101, %c0_102], %295 {strides = array<i32>} : memref<8x8xf32, #tpu.memory_space<vmem>>, vector<8x8xf32>,
    } else {
    }
    %c0_95 = arith.constant 0 : index
    %c0_96 = arith.constant 0 : index
    %289 = vector.load %arg7[%c0_95, %c0_96] : memref<8x8xf32, #tpu.memory_space<vmem>>, vector<8x8xf32>
    %290 = arith.addf %289, %285 : vector<8x8xf32>
    %c0_97 = arith.constant 0 : index
    %c0_98 = arith.constant 0 : index
    %291 = vector.load %arg7[%c0_97, %c0_98] : memref<8x8xf32, #tpu.memory_space<vmem>>, vector<8x8xf32>
    tpu.vector_store %arg7[%c0_97, %c0_98], %290 {strides = array<i32>} : memref<8x8xf32, #tpu.memory_space<vmem>>, vector<8x8xf32>,
    %c2_i32 = arith.constant 2 : i32
    %292 = arith.cmpi eq, %arg1, %c2_i32 : i32
    %293 = arith.extui %292 : i1 to i32
    %c0_i32_99 = arith.constant 0 : i32
    %294 = arith.cmpi ne, %293, %c0_i32_99 : i32
    scf.if %294 {
      %c0_100 = arith.constant 0 : index
      %c0_101 = arith.constant 0 : index
      %295 = vector.load %arg7[%c0_100, %c0_101] : memref<8x8xf32, #tpu.memory_space<vmem>>, vector<8x8xf32>
      %c0_102 = arith.constant 0 : index
      %c0_103 = arith.constant 0 : index
      %296 = vector.load %arg6[%c0_102, %c0_103] : memref<8x8xf32, #tpu.memory_space<vmem>>, vector<8x8xf32>
      tpu.vector_store %arg6[%c0_102, %c0_103], %295 {strides = array<i32>} : memref<8x8xf32, #tpu.memory_space<vmem>>, vector<8x8xf32>,
    } else {
    }
    return
  }
  func.func @transform_0(%arg0: i32, %arg1: i32) -> (i32, i32) {
    %c0_i32 = arith.constant 0 : i32
    return %arg0, %arg1 : i32, i32
  }
  func.func @transform_1(%arg0: i32, %arg1: i32) -> (i32, i32) {
    %c0_i32 = arith.constant 0 : i32
    %c0_i32_0 = arith.constant 0 : i32
    return %c0_i32, %arg1 : i32, i32
  }
  func.func @transform_2(%arg0: i32, %arg1: i32) -> (i32, i32) {
    %c0_i32 = arith.constant 0 : i32
    %c0_i32_0 = arith.constant 0 : i32
    return %c0_i32, %arg1 : i32, i32
  }
  func.func @transform_3(%arg0: i32, %arg1: i32) -> (i32, i32, i32) {
    %c0_i32 = arith.constant 0 : i32
    %c0_i32_0 = arith.constant 0 : i32
    %c0_i32_1 = arith.constant 0 : i32
    return %c0_i32, %c0_i32_0, %arg1 : i32, i32, i32
  }
  func.func @transform_4(%arg0: i32, %arg1: i32) -> (i32, i32) {
    %c0_i32 = arith.constant 0 : i32
    %c0_i32_0 = arith.constant 0 : i32
    return %arg0, %c0_i32 : i32, i32
  }
}

</mosaic_0001>

<bundles_post_ra>
// kernel: tpu_custom_call.1
= control target key start
LH: loop header
LB: loop body
LE: loop exit
PB: predicated region body
PF: predicated region fallthrough
CT: control target
= control target key end

     0   :  { %s3010_s0 = inlined_call_operand.hbm [shape: f32[8,768], index: 0, kind: input, shape index: {}]   ;;  %s3011_s1 = inlined_call_operand.hbm [shape: f32[11,768], index: 1, kind: input, shape index: {}]   ;;  %s3012_s2 = inlined_call_operand.hbm [shape: f32[27,768], index: 2, kind: input, shape index: {}]   ;;  %s3013_s3 = inlined_call_operand.hbm [shape: bf16[8,8,768], index: 3, kind: input, shape index: {}]   ;;  %s3014_s4 = inlined_call_operand.hbm [shape: f32[8,8], index: 4, kind: output, shape index: {}]  }
   0x1   :  { %3020 = sst [smem:[#allocation17_spill]] %s3011_s1 }
   0x2   :  { %9 = vsyncpa [#allocation4], 0 }
   0x3   :  { %11 = vsyncpa [#allocation4 + $0x1], 0 }
   0x4   :  { %12 = vsyncpa [#allocation7], 0 }
   0x5   :  { %14 = vsyncpa [#allocation7 + $0x1], 0 }
   0x6   :  { %15 = vsyncpa [#allocation10], 0 }
   0x7   :  { %17 = vsyncpa [#allocation10 + $0x1], 0 }
   0x8   :  { %18 = vsyncpa [#allocation5], 0  ;;  %s2197_s15 = smov 0   ;;  %s2199_s16 = smov 0  }
   0x9   :  { %s2201_s17 = smov 0   ;;  %s2203_s18 = smov 0  }
   0xa   :  { %s2205_s19 = smov 0   ;;  %s2207_s20 = smov 0  }
   0xb LB: > { %s2226_s21 = sadd.s32 4294967295, %s2157_s20   ;;  %s33_s22 = sadd.s32 1, %s2153_s19  ;;  %s2157_s20 = sphi %s2207_s20, %s24_s20   ;;  %s2153_s19 = sphi %s2205_s19, %s3039_s19   ;;  %s2149_s18 = sphi %s2203_s18, %s3038_s18   ;;  %s2145_s17 = sphi %s2201_s17, %s3037_s17   ;;  %s2141_s16 = sphi %s2199_s16, %s3036_s16   ;;  %s2137_s15 = sphi %s2197_s15, %s3035_s15  }
   0xc   : > { %p34_p0 = scmp.ge.s32.totalorder %s33_s22, 3  ;;  %s45_s23 = sadd.s32 1, %s2145_s17 }
   0xd   : > { %p52_p1 = scmp.ne.s32.totalorder %s2145_s17, %s2141_s16  ;;  %p53_p2 = scmp.eq.s32.totalorder %s2157_s20, 0 }
   0xe   : > { %s3041_s22 = smov (%p34_p0, %s33_s22), 0  ;;  %p58_p4 = scmp.ne.s32.totalorder %s2141_s16, %s2137_s15 }
   0xf   : > { %3021 = sst [smem:[#allocation16_spill]] %s3041_s22  ;;  %p54_p3 = por %p53_p2, %p52_p1 }
  0x10   : > { %s41_s24 = ssub.s32 %s2153_s19, %s3041_s22  ;;  %p59_p5 = scmp.eq.s32.totalorder %s2226_s21, 0 }
  0x11   : > { %p43_p6 = scmp.eq.s32.totalorder %s41_s24, 0  ;;  %p1865_p8 = scmp.lt.s32.totalorder %s2157_s20, 3 }
  0x12   : > { %p2239_p7 = por %p59_p5, %p58_p4  ;;  %s2248_s27 = sand.u32 1, %s2145_s17  }
  0x13   : > { %s2245_s26 = scalar_select %p43_p6, %s2145_s17, %s45_s23  }
  0x14   : > { %s3022_s25 = scalar_select %p2239_p7, 1, 0 }
  0x15   : > { %s2251_s28 = sshll.u32 %s2153_s19, 8  ;;  %p2253_p9 = pnand %p1865_p8, %p54_p3 }
  0x16   : > { %s207_s30 = sand.u32 1, %s2157_s20   ;;  %s1733_s5 = sshll.u32 %s2248_s27, 5 }
  0x17   : > { %s3024_s1 = sld [smem:[#allocation17_spill]]  ;;  %s211_s9 = scalar_lea.vmem [#allocation6], %s1733_s5 }
  0x18   : > { %s218_s10 = sshll.u32 %s211_s9, 4  ;;  %s2267_s11 = scalar_lea.sflag [#allocation7], %s207_s30  ;;  %s2265_s10 = int_to_ptr.vmem [resolvable:$true] %s218_s10 }
  0x19   : > { %p2273_p11 = pneg %p2253_p9 }
  0x1d   : > { %s2263_s8 = scalar_lea.hbm %s3024_s1, %s2251_s28  ;;  %s1954_s23 = scalar_lea.hbm %s3024_s1, 1536 }
  0x1e   : > { %s1949_s12 = scalar_lea.hbm %s2263_s8, 512  ;;  %p1955_p0 = scmp.lt.u32.totalorder %s2263_s8, %s3024_s1 }
  0x1f   : > { %p1950_p10 = scmp.ne.s32.totalorder %s2263_s8, %s1949_s12  ;;  %p1956_p1 = scmp.lt.u32.totalorder %s1954_s23, %s1949_s12 }
  0x20   : > { %p1958_p3 = scmp.lt.u32.totalorder %s1949_s12, %s2263_s8 }
  0x21   : > { %p1952_p12 = pnand %p2273_p11, %p1950_p10  ;;  %p1957_p2 = por %p1956_p1, %p1955_p0 }
  0x23   : > { %p1953_p13 = pneg %p1952_p12  ;;  %p1959_p4 = por %p1958_p3, %p1957_p2 }
  0x25   : > { %p1960_p5 = pnand %p1959_p4, %p1953_p13 }
  0x27   : > { %1963 = shalt.err (!%p1960_p5)
}
  0x28   : > { %s1964_s30 = scalar_lea.vmem %s2265_s10, 512  ;;  %s2159_s6 = smov [#allocation6]  }
  0x29   : > { %p1965_p6 = scmp.ne.s32.totalorder %s2265_s10, %s1964_s30  ;;  %s1969_s7 = sshll.u32 %s2159_s6, 4  ;;  %s1970_s7 = int_to_ptr.vmem [resolvable:$false] %s1969_s7 }
  0x2a   : > { %s1971_s9 = scalar_lea.vmem %s1970_s7, 1024  ;;  %p1972_p12 = scmp.lt.s32.totalorder %s2265_s10, %s1970_s7 }
  0x2b   : > { %p1967_p8 = pnand %p1965_p6, %p2273_p11  ;;  %p1973_p7 = scmp.lt.s32.totalorder %s1971_s9, %s1964_s30 }
  0x2d   : > { %p1968_p10 = pneg %p1967_p8  ;;  %p1974_p0 = por %p1973_p7, %p1972_p12 }
  0x2f   : > { %p1975_p1 = pnand %p1974_p0, %p1968_p10 }
  0x31   : > { %1978 = shalt.err (!%p1975_p1)
}
  0x32   : > { %s3016_s12 = smov 768   ;;  %s3017_s14 = smov 256  }
  0x33   : > { %s3018_s15 = smov 16   ;;  %p1742_p7 = scmp.ge.s32.totalorder %s2157_s20, 1 }
  0x34   : > { %1858 = dma.hbm_to_vmem [thread:$0]  (!%p2253_p9), %s2263_s8, 512, %s2265_s10, %s2267_s11, %s3016_s12, %s3017_s14, %s3018_s15  }
  0x35   : > { %p268_p13 = scmp.lt.s32.totalorder %s2157_s20, 4  ;;  %s1730_s24 = sshll.u32 %s2248_s27, 4 }
  0x36   : > { %s2311_s6 = scalar_lea.hbm %s3010_s0, %s2251_s28  ;;  %s190_s9 = scalar_lea.vmem [#allocation3], %s1730_s24 }
  0x37   : > { %p2302_p2 = pnand %p1742_p7, %p268_p13  ;;  %s200_s1 = sshll.u32 %s190_s9, 4  ;;  %s2314_s1 = int_to_ptr.vmem [resolvable:$true] %s200_s1 }
  0x38   : > { %s2320_s12 = scalar_lea.hbm %s3012_s2, %s2251_s28  ;;  %s187_s14 = scalar_lea.sflag [#allocation4], %s2248_s27 }
  0x39   : > { %s3026_s23 = scalar_select %p2302_p2, 1, 0 }
  0x3a   : > { %s1979_s15 = scalar_lea.hbm %s2311_s6, 256  ;;  %s1984_s22 = scalar_lea.hbm %s3010_s0, 768 }
  0x3b   : > { %p1980_p3 = scmp.ne.s32.totalorder %s2311_s6, %s1979_s15  ;;  %p1985_p6 = scmp.lt.u32.totalorder %s2311_s6, %s3010_s0 }
  0x3c   : > { %p1986_p8 = scmp.lt.u32.totalorder %s1984_s22, %s1979_s15  ;;  %p1988_p12 = scmp.lt.u32.totalorder %s1979_s15, %s2311_s6 }
  0x3d   : > { %p1982_p4 = pnand %p1980_p3, %p2273_p11 }
  0x3e   : > { %p1987_p10 = por %p1986_p8, %p1985_p6 }
  0x3f   : > { %p1983_p5 = pneg %p1982_p4 }
  0x40   : > { %p1989_p0 = por %p1988_p12, %p1987_p10 }
  0x42   : > { %p1990_p1 = pnand %p1989_p0, %p1983_p5 }
  0x44   : > { %1993 = shalt.err (!%p1990_p1)
}
  0x45   : > { %s1994_s28 = scalar_lea.vmem %s2314_s1, 256  ;;  %s2163_s9 = smov [#allocation3]  }
  0x46   : > { %p1995_p7 = scmp.ne.s32.totalorder %s2314_s1, %s1994_s28  ;;  %s1999_s8 = sshll.u32 %s2163_s9, 4  ;;  %s2000_s8 = int_to_ptr.vmem [resolvable:$false] %s1999_s8 }
  0x47   : > { %s2001_s7 = scalar_lea.vmem %s2000_s8, 512  ;;  %p2002_p4 = scmp.lt.s32.totalorder %s2314_s1, %s2000_s8 }
  0x48   : > { %p1997_p13 = pnand %p1995_p7, %p2273_p11  ;;  %p2003_p2 = scmp.lt.s32.totalorder %s2001_s7, %s1994_s28 }
  0x4a   : > { %p1998_p3 = pneg %p1997_p13  ;;  %p2004_p6 = por %p2003_p2, %p2002_p4 }
  0x4c   : > { %p2005_p8 = pnand %p2004_p6, %p1998_p3 }
  0x4e   : > { %2008 = shalt.err (!%p2005_p8)
}
  0x4f   : > { %1855 = dma.hbm_to_vmem [thread:$0]  (!%p2253_p9), %s2311_s6, 256, %s2314_s1, %s187_s14  }
  0x50   : > { %s3027_s22 = sshll.u32 %s2248_s27, 6  ;;  %s2009_s5 = scalar_lea.hbm %s2320_s12, 1024 }
  0x51   : > { %s232_s15 = scalar_lea.vmem [#allocation8], %s3027_s22  ;;  %p2010_p2 = scmp.ne.s32.totalorder %s2320_s12, %s2009_s5 }
  0x52   : > { %s239_s10 = sshll.u32 %s232_s15, 4  ;;  %s2014_s28 = scalar_lea.hbm %s3012_s2, 3072  ;;  %s2346_s10 = int_to_ptr.vmem [resolvable:$true] %s239_s10 }
  0x53   : > { %p2012_p5 = pnand %p2010_p2, %p2273_p11  ;;  %p2015_p12 = scmp.lt.u32.totalorder %s2320_s12, %s3012_s2 }
  0x54   : > { %p2016_p0 = scmp.lt.u32.totalorder %s2014_s28, %s2009_s5  ;;  %p2018_p7 = scmp.lt.u32.totalorder %s2009_s5, %s2320_s12 }
  0x55   : > { %p2013_p10 = pneg %p2012_p5 }
  0x56   : > { %p2017_p1 = por %p2016_p0, %p2015_p12 }
  0x58   : > { %p2019_p13 = por %p2018_p7, %p2017_p1 }
  0x5a   : > { %p2020_p3 = pnand %p2019_p13, %p2013_p10 }
  0x5c   : > { %2023 = shalt.err (!%p2020_p3)
}
  0x5d   : > { %s2024_s1 = scalar_lea.vmem %s2346_s10, 1024  ;;  %s2164_s14 = smov [#allocation8]  }
  0x5e   : > { %p2025_p4 = scmp.ne.s32.totalorder %s2346_s10, %s2024_s1  ;;  %s2029_s6 = sshll.u32 %s2164_s14, 4  ;;  %s2030_s6 = int_to_ptr.vmem [resolvable:$false] %s2029_s6 }
  0x5f   : > { %s2031_s7 = scalar_lea.vmem %s2030_s6, 2048  ;;  %p2032_p2 = scmp.lt.s32.totalorder %s2346_s10, %s2030_s6 }
  0x60   : > { %p2027_p6 = pnand %p2025_p4, %p2273_p11  ;;  %p2033_p5 = scmp.lt.s32.totalorder %s2031_s7, %s2024_s1 }
  0x62   : > { %p2028_p8 = pneg %p2027_p6  ;;  %p2034_p12 = por %p2033_p5, %p2032_p2 }
  0x64   : > { %p2035_p0 = pnand %p2034_p12, %p2028_p8 }
  0x66   : > { %2038 = shalt.err (!%p2035_p0)
}
  0x67   : > { %s3028_s22 = smov 16   ;;  %s3029_s15 = smov 256  }
  0x68   : > { %s3030_s5 = smov 768   ;;  %s1839_s30 = sshll.u32 %s2153_s19, 7 }
  0x69   : > { %1861 = dma.hbm_to_vmem [thread:$0]  (!%p2253_p9), %s2320_s12, 1024, %s2346_s10, %s2267_s11, %s3030_s5, %s3029_s15, %s3028_s22  }
  0x6a   : > { %s3031_s24 = sshll.u32 %s2248_s27, 6  ;;  %s2379_s14 = scalar_lea.hbm %s3013_s3, %s1839_s30 }
  0x6b   : > { %s253_s28 = scalar_lea.vmem [#allocation9], %s3031_s24  ;;  %s250_s6 = scalar_lea.sflag [#allocation10], %s2248_s27 }
  0x6c   : > { %s260_s9 = sshll.u32 %s253_s28, 4  ;;  %s2039_s7 = scalar_lea.hbm %s2379_s14, 1024  ;;  %s2381_s9 = int_to_ptr.vmem [resolvable:$true] %s260_s9 }
  0x6d   : > { %p2040_p10 = scmp.ne.s32.totalorder %s2379_s14, %s2039_s7  ;;  %s2044_s10 = scalar_lea.hbm %s3013_s3, 3072 }
  0x6e   : > { %p2045_p13 = scmp.lt.u32.totalorder %s2379_s14, %s3013_s3  ;;  %p2046_p3 = scmp.lt.u32.totalorder %s2044_s10, %s2039_s7 }
  0x6f   : > { %p2042_p1 = pnand %p2040_p10, %p2273_p11  ;;  %p2048_p6 = scmp.lt.u32.totalorder %s2039_s7, %s2379_s14 }
  0x70   : > { %p2047_p4 = por %p2046_p3, %p2045_p13 }
  0x71   : > { %p2043_p7 = pneg %p2042_p1 }
  0x72   : > { %p2049_p8 = por %p2048_p6, %p2047_p4 }
  0x74   : > { %p2050_p2 = pnand %p2049_p8, %p2043_p7 }
  0x76   : > { %2053 = shalt.err (!%p2050_p2)
}
  0x77   : > { %s2054_s5 = scalar_lea.vmem %s2381_s9, 1024  ;;  %s2165_s30 = smov [#allocation9]  }
  0x78   : > { %p2055_p5 = scmp.ne.s32.totalorder %s2381_s9, %s2054_s5  ;;  %s2059_s24 = sshll.u32 %s2165_s30, 4  ;;  %s2060_s24 = int_to_ptr.vmem [resolvable:$false] %s2059_s24 }
  0x79   : > { %s2061_s28 = scalar_lea.vmem %s2060_s24, 2048  ;;  %p2062_p10 = scmp.lt.s32.totalorder %s2381_s9, %s2060_s24 }
  0x7a   : > { %p2057_p12 = pnand %p2055_p5, %p2273_p11  ;;  %p2063_p1 = scmp.lt.s32.totalorder %s2061_s28, %s2054_s5 }
  0x7c   : > { %p2058_p0 = pneg %p2057_p12  ;;  %p2064_p13 = por %p2063_p1, %p2062_p10 }
  0x7e   : > { %p2065_p3 = pnand %p2064_p13, %p2058_p0 }
  0x80   : > { %2068 = shalt.err (!%p2065_p3)
}
  0x81   : > { %s2166_s8 = smov 384   ;;  %s2167_s1 = smov 128  }
  0x82   : > { %s2168_s7 = smov 8   ;;  %p3032_p11 = scmp.ne.s32.totalorder %s3026_s23, 0 }
  0x83   : > { %1864 = dma.hbm_to_vmem [thread:$0]  (!%p2253_p9), %s2379_s14, 1024, %s2381_s9, %s250_s6, %s2166_s8, %s2167_s1, %s2168_s7  }
  0x84   : > { %272 = sbr.rel (%p3032_p11) target bundleno = 515 (0x203), region = 36  ;;  %s274_s13 = sand.u32 (!%p3032_p11), 1, %s2141_s16  }
  0x85   : > { %s1743_s11 = sshll.u32 (!%p3032_p11), %s274_s13, 4  ;;  %s275_s12 = scalar_lea.sflag (!%p3032_p11), [#allocation4], %s274_s13 }
  0x86   : > { %s2410_s10 = scalar_lea.vmem (!%p3032_p11), [#allocation3], %s1743_s11  ;;  %p3033_p7 = scmp.ne.s32.totalorder (!%p3032_p11), %s3022_s25, 0 }
  0x8b   : > { %2120 = dma.done.wait (%p3033_p7), %s275_s12, 256  }
  0x8c   : > { %2122 = vsyncadd (%p3033_p7), %s275_s12, 4294967040  ;;  %s283_s29 = sand.u32 1, %s2226_s21   ;;  %s1744_s27 = sshll.u32 %s274_s13, 5 }
  0x8d   : > { %s284_s9 = scalar_lea.sflag [#allocation7], %s283_s29  ;;  %s2417_s14 = scalar_lea.vmem [#allocation6], %s1744_s27 }
  0x8e   : > { %2124 = dma.done.wait (%p3033_p7), %s284_s9, 1536  }
  0x8f   : > { %2126 = vsyncadd (%p3033_p7), %s284_s9, 4294965760  ;;  %s1745_s23 = sshll.u32 %s274_s13, 6  ;;  %s302_s22 = scalar_lea.sflag [#allocation10], %s274_s13 }
  0x90   : > { %s2423_s6 = scalar_lea.vmem [#allocation8], %s1745_s23  ;;  %s2425_s15 = scalar_lea.vmem [#allocation9], %s1745_s23 }
  0x91   : > { %2128 = dma.done.wait (%p3033_p7), %s302_s22, 1024  }
  0x92   : > { %2130 = vsyncadd (%p3033_p7), %s302_s22, 4294966272  ;;  %v349_v0 = vlaneseq  ;;  %v1807_v3 = vld [vmem:[%s2425_s15 + $0x8] sm:$0xff]  ;;  %v1161_v4 = vld [vmem:[%s2425_s15] sm:$0xff]  ;;  %v2169_v30 = vmov 0.0   ;;  %p1830_p9 = scmp.ne.s32.totalorder %s2149_s18, 0 }
  0x93   : > { %v1809_v6 = vcombine.high %v1807_v3, %v1807_v3  ;;  %v1808_v7 = vcombine.low %v1807_v3, %v1807_v3  ;;  %v1811_v8 = vcombine.high %v1161_v4, %v1161_v4  ;;  %v1810_v9 = vcombine.low %v1161_v4, %v1161_v4  ;;  %v2438_v10 = vld [vmem:[%s2410_s10 + $0x8] sm:$0xff] }
  0x94   : > { %v350_v1 = vshrl.u32 %v349_v0, 7  ;;  %v2441_v11 = vld [vmem:[%s2417_s14] ss:$8 sm:$0x3] }
  0x95   : > { %v2444_v12 = vld [vmem:[%s2417_s14 + $0x1] ss:$8 sm:$0x3]  ;;  %v2451_v15 = vld [vmem:[%s2417_s14 + $0x2] ss:$8 sm:$0x3]  ;;  %1173 = vmatprep.subr.bf16.mxu0 %v1809_v6  ;;  %1220 = vmatprep.subr.bf16.mxu1 %v1811_v8 }
  0x96   : > { %v2431_v2 = vsub.s32 1, %v350_v1  ;;  %v2435_v5 = vsub.s32 0, %v350_v1  ;;  %v2454_v16 = vld [vmem:[%s2417_s14 + $0x3] ss:$8 sm:$0x3]  ;;  %1174 = vmatpush1.bf16.xpose.msra.mxu0 %v1808_v7  ;;  %1221 = vmatpush1.bf16.xpose.msra.mxu1 %v1810_v9 }
  0x97   : > { %v2459_v18 = vld [vmem:[%s2417_s14 + $0x4] ss:$8 sm:$0x3]  ;;  %v2462_v19 = vld [vmem:[%s2417_s14 + $0x5] ss:$8 sm:$0x3] }
  0x98   : > { %v356_v13 = vrot.slane %v2441_v11, %v2431_v2  ;;  %v371_v14 = vrot.slane %v2444_v12, %v2431_v2  ;;  %v386_v17 = vrot.slane %v2451_v15, %v2431_v2  ;;  %v401_v22 = vrot.slane %v2454_v16, %v2431_v2  ;;  %v2495_v33 = vld [vmem:[%s2423_s6] ss:$8 sm:$0x3]  ;;  %v2503_v37 = vld [vmem:[%s2423_s6 + $0x1] ss:$8 sm:$0x3] }
  0x99   : > { %v352_v23 = vrot.slane %v2441_v11, %v2435_v5  ;;  %v367_v24 = vrot.slane %v2444_v12, %v2435_v5  ;;  %v416_v26 = vrot.slane %v2459_v18, %v2431_v2  ;;  %v431_v28 = vrot.slane %v2462_v19, %v2431_v2  ;;  %v2510_v41 = vld [vmem:[%s2423_s6 + $0x2] ss:$8 sm:$0x3]  ;;  %v2519_v45 = vld [vmem:[%s2423_s6 + $0x3] ss:$8 sm:$0x3] }
  0x9a   : > { %v2465_v20 = vsub.f32 %v2438_v10, %v356_v13  ;;  %v2468_v21 = vsub.f32 %v2438_v10, %v371_v14  ;;  %v2477_v25 = vsub.f32 %v2438_v10, %v386_v17  ;;  %v2482_v27 = vsub.f32 %v2438_v10, %v401_v22  ;;  %v2536_v54 = vld [vmem:[%s2423_s6 + $0x12] ss:$8 sm:$0x3]  ;;  %v2545_v59 = vld [vmem:[%s2423_s6 + $0x13] ss:$8 sm:$0x3] }
  0x9b   : > { %v2489_v29 = vsub.f32 %v2438_v10, %v416_v26  ;;  %v2498_v34 = vsub.f32 %v2438_v10, %v431_v28  ;;  %v382_v38 = vrot.slane %v2451_v15, %v2435_v5  ;;  %v606_v44 = vrot.slane %v2495_v33, %v2431_v2  ;;  %v2553_v0 = vld [vmem:[%s2423_s6 + $0x14] ss:$8 sm:$0x3]  ;;  %v2562_v7 = vld [vmem:[%s2423_s6 + $0x23] ss:$8 sm:$0x3] }
  0x9c   : > { %vm512_vm0 = vcmp.ge.f32.partialorder %v2465_v20, 0.0  ;;  %vm518_vm1 = vcmp.ge.f32.partialorder %v2468_v21, 0.0  ;;  %vm524_vm2 = vcmp.ge.f32.partialorder %v2477_v25, 0.0  ;;  %vm530_vm3 = vcmp.ge.f32.partialorder %v2482_v27, 0.0  ;;  %v2580_v22 = vld [vmem:[%s2410_s10] sm:$0xff] }
  0x9d   : > { %v1758_v31 = vsel %vm512_vm0, 1.0, %v2169_v30  ;;  %v1760_v32 = vsel %vm518_vm1, 1.0, %v2169_v30  ;;  %v1762_v35 = vsel %vm524_vm2, 1.0, %v2169_v30  ;;  %v1764_v39 = vsel %vm530_vm3, 1.0, %v2169_v30 }
  0x9e   : > { %v578_v36 = vsub.f32 %v1758_v31, %v1760_v32  ;;  %vm536_vm4 = vcmp.ge.f32.partialorder %v2489_v29, 0.0  ;;  %v580_v40 = vsub.f32 %v1760_v32, %v1762_v35  ;;  %vm542_vm5 = vcmp.ge.f32.partialorder %v2498_v34, 0.0  ;;  %v2565_v8 = vld [vmem:[%s2423_s6 + $0x24] ss:$8 sm:$0x3] }
  0x9f   : > { %v2513_v42 = vsel %vm536_vm4, 1.0, %v2169_v30  ;;  %v582_v43 = vsub.f32 %v1762_v35, %v1764_v39  ;;  %v397_v46 = vrot.slane %v2454_v16, %v2435_v5  ;;  %v2524_v47 = vsel %vm542_vm5, 1.0, %v2169_v30 }
  0xa0   : > { %v584_v48 = vsub.f32 %v1764_v39, %v2513_v42  ;;  %v621_v49 = vrot.slane %v2503_v37, %v2431_v2  ;;  %v412_v50 = vrot.slane %v2459_v18, %v2435_v5  ;;  %v427_v51 = vrot.slane %v2462_v19, %v2435_v5 }
  0xa1   : > { %v610_v52 = vmul.f32 %v606_v44, %v578_v36  ;;  %v636_v53 = vrot.slane %v2510_v41, %v2431_v2  ;;  %v602_v55 = vrot.slane %v2495_v33, %v2435_v5  ;;  %v617_v56 = vrot.slane %v2503_v37, %v2435_v5 }
  0xa2   : > { %v625_v57 = vmul.f32 %v621_v49, %v580_v40  ;;  %v651_v58 = vrot.slane %v2519_v45, %v2431_v2  ;;  %v586_v60 = vsub.f32 %v2513_v42, %v2524_v47  ;;  %v632_v61 = vrot.slane %v2510_v41, %v2435_v5 }
  0xa3   : > { %v640_v62 = vmul.f32 %v636_v53, %v582_v43  ;;  %v747_v63 = vmul.f32 %v610_v52, %v2465_v20  ;;  %v810_v6 = vrot.slane %v2536_v54, %v2431_v2  ;;  %v647_v9 = vrot.slane %v2519_v45, %v2435_v5 }
  0xa4   : > { %v2555_v1 = vmul.f32 %v651_v58, %v584_v48  ;;  %v749_v3 = vmul.f32 %v625_v57, %v2477_v25  ;;  %v753_v4 = vmul.f32 %v625_v57, %v2468_v21  ;;  %v825_v15 = vrot.slane %v2545_v59, %v2431_v2 }
  0xa5   : > { %v755_v13 = vmul.f32 %v640_v62, %v2482_v27  ;;  %v759_v14 = vmul.f32 %v640_v62, %v2477_v25  ;;  %v806_v18 = vrot.slane %v2536_v54, %v2435_v5  ;;  %v840_v19 = vrot.slane %v2553_v0, %v2431_v2 }
  0xa6   : > { %v751_v16 = vsub.f32 %v747_v63, %v749_v3  ;;  %v761_v17 = vmul.f32 %v2555_v1, %v2489_v29  ;;  %v993_v28 = vrot.slane %v2562_v7, %v2431_v2  ;;  %v1008_v31 = vrot.slane %v2565_v8, %v2431_v2 }
  0xa7   : > { %v757_v26 = vsub.f32 %v753_v4, %v755_v13  ;;  %v2590_v32 = vsub.f32 %v2580_v22, %v352_v23  ;;  %v2596_v39 = vsub.f32 %v2580_v22, %v367_v24  ;;  %v2599_v40 = vsub.f32 %v2580_v22, %v382_v38 }
  0xa8   : > { %v763_v35 = vsub.f32 %v759_v14, %v761_v17  ;;  %v814_v36 = vmul.f32 %v810_v6, %v751_v16  ;;  %v2602_v43 = vsub.f32 %v2580_v22, %v397_v46  ;;  %v2605_v11 = vsub.f32 %v2580_v22, %v412_v50  ;;  %v2641_v16 = vld [vmem:[%s2425_s15 + $0x10] sm:$0xff] }
  0xa9   : > { %v829_v41 = vmul.f32 %v825_v15, %v757_v26  ;;  %v2608_v23 = vsub.f32 %v2580_v22, %v427_v51  ;;  %vm511_vm6 = vcmp.ge.f32.partialorder %v2590_v32, 0.0  ;;  %vm517_vm7 = vcmp.ge.f32.partialorder %v2596_v39, 0.0 }
  0xaa   : > { %v2610_v44 = vmul.f32 %v840_v19, %v763_v35  ;;  %v936_v12 = vmul.f32 %v814_v36, %v2465_v20  ;;  %v1757_v45 = vsel %vm511_vm6, 1.0, %v2169_v30  ;;  %v1759_v46 = vsel %vm517_vm7, 1.0, %v2169_v30 }
  0xab   : > { %v938_v24 = vmul.f32 %v829_v41, %v2482_v27  ;;  %v942_v38 = vmul.f32 %v829_v41, %v2468_v21  ;;  %vm523_vm8 = vcmp.ge.f32.partialorder %v2599_v40, 0.0  ;;  %vm529_vm9 = vcmp.ge.f32.partialorder %v2602_v43, 0.0 }
  0xac   : > { %v944_v48 = vmul.f32 %v2610_v44, %v2489_v29  ;;  %vm535_vm10 = vcmp.ge.f32.partialorder %v2605_v11, 0.0  ;;  %v1761_v50 = vsel %vm523_vm8, 1.0, %v2169_v30  ;;  %v1763_v51 = vsel %vm529_vm9, 1.0, %v2169_v30 }
  0xad   : > { %v940_v49 = vsub.f32 %v936_v12, %v938_v24  ;;  %v1765_v52 = vsel %vm535_vm10, 1.0, %v2169_v30  ;;  %vm541_vm11 = vcmp.ge.f32.partialorder %v2608_v23, 0.0  ;;  %v577_v57 = vsub.f32 %v1757_v45, %v1759_v46 }
  0xae   : > { %v946_v53 = vsub.f32 %v942_v38, %v944_v48  ;;  %v579_v58 = vsub.f32 %v1759_v46, %v1761_v50  ;;  %v821_v62 = vrot.slane %v2545_v59, %v2435_v5  ;;  %v581_v3 = vsub.f32 %v1761_v50, %v1763_v51 }
  0xaf   : > { %v997_v63 = vmul.f32 %v993_v28, %v940_v49  ;;  %v583_v4 = vsub.f32 %v1763_v51, %v1765_v52  ;;  %v836_v6 = vrot.slane %v2553_v0, %v2435_v5  ;;  %v609_v14 = vmul.f32 %v602_v55, %v577_v57  ;;  %v2653_v28 = vld [vmem:[%s2425_s15 + $0x18] sm:$0xff] }
  0xb0   : > { %v2632_v13 = vmul.f32 %v1008_v31, %v946_v53  ;;  %v624_v15 = vmul.f32 %v617_v56, %v579_v58  ;;  %v2645_v17 = vsel %vm541_vm11, 1.0, %v2169_v30  ;;  %v639_v19 = vmul.f32 %v632_v61, %v581_v3  ;;  %v1791_v57 = vld [vmem:[%s2423_s6 + $0x15] ss:$8 sm:$0x3] }
  0xb1   : > { %v1104_v59 = vmul.f32 %v997_v63, %v2465_v20  ;;  %v654_v0 = vmul.f32 %v647_v9, %v583_v4  ;;  %v746_v33 = vmul.f32 %v609_v14, %v2590_v32  ;;  %v1814_v61 = vcombine.high %v2641_v16, %v2641_v16  ;;  %v1782_v9 = vld [vmem:[%s2423_s6 + $0x4] ss:$8 sm:$0x3] }
  0xb2   : > { %v1106_v26 = vmul.f32 %v2632_v13, %v2489_v29  ;;  %v748_v55 = vmul.f32 %v624_v15, %v2599_v40  ;;  %v752_v37 = vmul.f32 %v624_v15, %v2596_v39  ;;  %v754_v56 = vmul.f32 %v639_v19, %v2602_v43 }
  0xb3   : > { %v758_v20 = vmul.f32 %v639_v19, %v2599_v40  ;;  %v760_v31 = vmul.f32 %v654_v0, %v2605_v11  ;;  %v585_v36 = vsub.f32 %v1765_v52, %v2645_v17  ;;  %v1806_v12 = vmul.f32 -1.442695, %v2438_v10  ;;  %1271 = vmatprep.subr.bf16.mxu0 %v1814_v61 }
  0xb4   : > { %v1108_v35 = vsub.f32 %v1104_v59, %v1106_v26  ;;  %v750_v41 = vsub.f32 %v746_v33, %v748_v55  ;;  %v756_v24 = vsub.f32 %v752_v37, %v754_v56  ;;  %v1817_v45 = vcombine.high %v2653_v28, %v2653_v28  ;;  %v1799_v59 = vld [vmem:[%s2423_s6 + $0x25] ss:$8 sm:$0x3] }
  0xb5   : > { %v762_v38 = vsub.f32 %v758_v20, %v760_v31  ;;  %v1805_v46 = vmul.f32 -1.442695, %v2580_v22  ;;  %1941 = vpow2.f32 %v1806_v12  ;;  %v662_v50 = vrot.slane %v1782_v9, %v2435_v5  ;;  %v1783_v12 = vld [vmem:[%s2423_s6 + $0x5] ss:$8 sm:$0x3] }
  0xb6   : > { %v1163_v48 = vpack.c.bf16 %v1108_v35, %v1108_v35  ;;  %v813_v49 = vmul.f32 %v806_v18, %v750_v41  ;;  %v828_v51 = vmul.f32 %v821_v62, %v756_v24  ;;  %1323 = vmatprep.subr.bf16.mxu1 %v1817_v45  ;;  %v666_v53 = vrot.slane %v1782_v9, %v2431_v2 }
  0xb7   : > { %v843_v52 = vmul.f32 %v836_v6, %v762_v38  ;;  %1943 = vpow2.f32 %v1805_v46  ;;  %v989_v58 = vrot.slane %v2562_v7, %v2435_v5  ;;  %v1004_v63 = vrot.slane %v2565_v8, %v2435_v5 }
  0xb8   : > { %1205 = vmatprep.mubr.bf16.mxu0 %v1163_v48  ;;  %v935_v54 = vmul.f32 %v813_v49, %v2590_v32  ;;  %v765_v18 = vmul.f32 %v2555_v1, %v2482_v27  ;;  %v937_v62 = vmul.f32 %v828_v51, %v2602_v43  ;;  %v941_v3 = vmul.f32 %v828_v51, %v2596_v39  ;;  %v1752_v1 = vld [vmem:[%s2417_s14 + $0x6] ss:$8 sm:$0x3] }
  0xb9   : > { %v943_v4 = vmul.f32 %v843_v52, %v2605_v11  ;;  %v670_v7 = vmul.f32 %v666_v53, %v586_v60  ;;  %v855_v6 = vrot.slane %v1791_v57, %v2431_v2  ;;  %v2688_v19 = vmul.f32 %v662_v50, %v585_v36  ;;  %v2696_v60 = vld [vmem:[%s2425_s15 + $0x20] sm:$0xff] }
  0xba   : > { %v939_v8 = vsub.f32 %v935_v54, %v937_v62  ;;  %v851_v26 = vrot.slane %v1791_v57, %v2435_v5  ;;  %v764_v33 = vmul.f32 %v654_v0, %v2602_v43  ;;  %v1813_v20 = vcombine.low %v2641_v16, %v2641_v16 }
  0xbb   : > { %v945_v14 = vsub.f32 %v941_v3, %v943_v4  ;;  %v767_v15 = vmul.f32 %v670_v7, %v2498_v34  ;;  %v766_v42 = vmul.f32 %v2688_v19, %v2608_v23  ;;  %v948_v31 = vmul.f32 %v2610_v44, %v2477_v25  ;;  %v2727_v3 = vld [vmem:[%s2423_s6 + $0x16] ss:$8 sm:$0x3] }
  0xbc   : > { %v996_v55 = vmul.f32 %v989_v58, %v939_v8  ;;  %v1019_v61 = vrot.slane %v1799_v59, %v2435_v5  ;;  %v446_v9 = vrot.slane %v1752_v1, %v2431_v2  ;;  %v1023_v38 = vrot.slane %v1799_v59, %v2431_v2 }
  0xbd   : > { %v1011_v37 = vmul.f32 %v1004_v63, %v945_v14  ;;  %v769_v56 = vsub.f32 %v765_v18, %v767_v15  ;;  %v768_v41 = vsub.f32 %v764_v33, %v766_v42  ;;  %v947_v45 = vmul.f32 %v843_v52, %v2599_v40  ;;  %v1753_v15 = vld [vmem:[%s2417_s14 + $0x7] ss:$8 sm:$0x3] }
  0xbe   : > { %v1103_v0 = vmul.f32 %v996_v55, %v2590_v32  ;;  %v1820_v16 = vcombine.high %v2696_v60, %v2696_v60  ;;  %v2712_v44 = vsub.f32 %v2438_v10, %v446_v9  ;;  %v442_v53 = vrot.slane %v1752_v1, %v2435_v5 }
  0xbf   : > { %v1105_v35 = vmul.f32 %v1011_v37, %v2605_v11  ;;  %v859_v36 = vmul.f32 %v855_v6, %v769_v56  ;;  %v1942_v24 = vpop.eup %1941  ;;  %v858_v50 = vmul.f32 %v851_v26, %v768_v41  ;;  %v681_v52 = vrot.slane %v1783_v12, %v2431_v2 }
  0xc0   : > { %v1152_v32 = vadd.f32 1.0, %v1942_v24  ;;  %vm548_vm12 = vcmp.ge.f32.partialorder %v2712_v44, 0.0  ;;  %v1816_v54 = vcombine.low %v2653_v28, %v2653_v28  ;;  %v1110_v18 = vmul.f32 %v2632_v13, %v2468_v21 }
  0xc1   : > { %v1944_v46 = vpop.eup %1943  ;;  %v1107_v48 = vsub.f32 %v1103_v0, %v1105_v35  ;;  %v950_v49 = vmul.f32 %v859_v36, %v2498_v34  ;;  %v949_v63 = vmul.f32 %v858_v50, %v2608_v23  ;;  %v2724_v62 = vsel %vm548_vm12, 1.0, %v2169_v30  ;;  %v2768_v35 = vld [vmem:[%s2425_s15 + $0x28] sm:$0xff] }
  0xc2   : > { %v1151_v51 = vadd.f32 1.0, %v1944_v46  ;;  %1945 = vrcp.f32 %v1152_v32  ;;  %v1819_v8 = vcombine.low %v2696_v60, %v2696_v60  ;;  %v588_v14 = vsub.f32 %v2524_v47, %v2724_v62 }
  0xc3   : > { %v1162_v57 = vpack.c.bf16 %v1107_v48, %v1107_v48  ;;  %v952_v58 = vsub.f32 %v948_v31, %v950_v49  ;;  %v951_v6 = vsub.f32 %v947_v45, %v949_v63  ;;  %v1109_v21 = vmul.f32 %v1011_v37, %v2596_v39  ;;  %v2749_v39 = vld [vmem:[%s2423_s6 + $0x26] ss:$8 sm:$0x3] }
  0xc4   : > { %1947 = vrcp.f32 %v1151_v51  ;;  %v677_v13 = vrot.slane %v1783_v12, %v2435_v5  ;;  %v771_v59 = vmul.f32 %v670_v7, %v2489_v29  ;;  %v2740_v1 = vsub.f32 %v2580_v22, %v442_v53 }
  0xc5   : > { %1206 = vmatmul.mubr.bf16.vlgmr.msra.gmra.mrb[0].mxu0 %v1162_v57  ;;  %v2729_v4 = vmul.f32 %v1023_v38, %v952_v58  ;;  %v2744_v33 = vmul.f32 %v1019_v61, %v951_v6  ;;  %v685_v47 = vmul.f32 %v681_v52, %v588_v14  ;;  %v866_v55 = vrot.slane %v2727_v3, %v2435_v5  ;;  %v1784_v61 = vld [vmem:[%s2423_s6 + $0x6] ss:$8 sm:$0x3] }
  0xc6   : > { %1272 = vmatpush1.bf16.xpose.msra.mxu0 %v1813_v20  ;;  %v870_v7 = vrot.slane %v2727_v3, %v2431_v2  ;;  %v954_v37 = vmul.f32 %v859_v36, %v2482_v27  ;;  %vm547_vm13 = vcmp.ge.f32.partialorder %v2740_v1, 0.0  ;;  %v461_v56 = vrot.slane %v1753_v15, %v2431_v2 }
  0xc7   : > { %v1112_v26 = vmul.f32 %v2729_v4, %v2498_v34  ;;  %1375 = vmatprep.subr.bf16.mxu0 %v1820_v16  ;;  %v1111_v60 = vmul.f32 %v2744_v33, %v2608_v23  ;;  %v773_v20 = vmul.f32 %v685_v47, %v2712_v44  ;;  %v2760_v31 = vsel %vm547_vm13, 1.0, %v2169_v30 }
  0xc8   : > { %v1034_v9 = vrot.slane %v2749_v39, %v2435_v5  ;;  %v1038_v0 = vrot.slane %v2749_v39, %v2431_v2  ;;  %v587_v36 = vsub.f32 %v2645_v17, %v2760_v31  ;;  %v2773_v41 = vsub.f32 %v2438_v10, %v461_v56 }
  0xc9   : > { %v1114_v42 = vsub.f32 %v1110_v18, %v1112_v26  ;;  %v1113_v24 = vsub.f32 %v1109_v21, %v1111_v60  ;;  %v775_v38 = vsub.f32 %v771_v59, %v773_v20  ;;  %v457_v45 = vrot.slane %v1753_v15, %v2435_v5  ;;  %v1793_v18 = vld [vmem:[%s2423_s6 + $0x17] ss:$8 sm:$0x3] }
  0xca   : > { %v684_v16 = vmul.f32 %v677_v13, %v587_v36  ;;  %v770_v46 = vmul.f32 %v2688_v19, %v2605_v11  ;;  %vm554_vm14 = vcmp.ge.f32.partialorder %v2773_v41, 0.0  ;;  %v696_v48 = vrot.slane %v1784_v61, %v2431_v2  ;;  %v2798_v21 = vld [vmem:[%s2425_s15 + $0x30] sm:$0xff] }
  0xcb   : > { %v1261_v12 = vpack.c.bf16 %v1114_v42, %v1114_v42  ;;  %v1260_v17 = vpack.c.bf16 %v1113_v24, %v1113_v24  ;;  %v874_v49 = vmul.f32 %v870_v7, %v775_v38  ;;  %v1823_v51 = vcombine.high %v2768_v35, %v2768_v35 }
  0xcc   : > { %v1946_v32 = vpop.eup %1945  ;;  %v2783_v53 = vsel %vm554_vm14, 1.0, %v2169_v30  ;;  %v772_v19 = vmul.f32 %v684_v16, %v2740_v1  ;;  %v953_v58 = vmul.f32 %v858_v50, %v2602_v43  ;;  %v692_v14 = vrot.slane %v1784_v61, %v2435_v5 }
  0xcd   : > { %1303 = vmatprep.mubr.bf16.mxu0 %v1261_v12  ;;  %v1158_v57 = vmul.f32 %v1946_v32, %v2438_v10  ;;  %v590_v63 = vsub.f32 %v2724_v62, %v2783_v53  ;;  %v956_v6 = vmul.f32 %v874_v49, %v2712_v44  ;;  %v2795_v15 = vsub.f32 %v2580_v22, %v457_v45  ;;  %v1754_v62 = vld [vmem:[%s2417_s14 + $0x10] ss:$8 sm:$0x3] }
  0xce   : > { %v1948_v52 = vpop.eup %1947  ;;  %1304 = vmatmul.mubr.bf16.vlgmr.msra.gmra.mrb[4].mxu0 %v1260_v17  ;;  %v774_v59 = vsub.f32 %v770_v46, %v772_v19  ;;  %v777_v26 = vmul.f32 %v685_v47, %v2498_v34  ;;  %v885_v42 = vrot.slane %v1793_v18, %v2431_v2  ;;  %v476_v12 = vrot.slane %v1754_v62, %v2431_v2 }
  0xcf   : > { %v1157_v3 = vmul.f32 %v1948_v52, %v2580_v22  ;;  %v1160_v13 = vpack.c.bf16 %v1158_v57, %v1158_v57  ;;  %1376 = vmatpush1.bf16.xpose.msra.mxu0 %v1819_v8  ;;  %v700_v50 = vmul.f32 %v696_v48, %v590_v63  ;;  %v958_v56 = vsub.f32 %v954_v37, %v956_v6 }
  0xd0   : > { %vm553_vm15 = vcmp.ge.f32.partialorder %v2795_v15, 0.0  ;;  %v873_v60 = vmul.f32 %v866_v55, %v774_v59  ;;  %v1826_v8 = vcombine.high %v2798_v21, %v2798_v21  ;;  %v1116_v37 = vmul.f32 %v2729_v4, %v2477_v25  ;;  %v1801_v4 = vld [vmem:[%s2423_s6 + $0x27] ss:$8 sm:$0x3] }
  0xd1   : > { %v1159_v7 = vpack.c.bf16 %v1157_v3, %v1157_v3  ;;  %1252 = vmatprep.mubr.bf16.mxu1 %v1160_v13  ;;  %v779_v20 = vmul.f32 %v700_v50, %v2773_v41  ;;  %v2806_v61 = vsel %vm553_vm15, 1.0, %v2169_v30  ;;  %v1042_v47 = vmul.f32 %v1038_v0, %v958_v56  ;;  %v2822_v0 = vld [vmem:[%s2423_s6 + $0x7] ss:$8 sm:$0x3] }
  0xd2   : > { %v589_v36 = vsub.f32 %v2760_v31, %v2806_v61  ;;  %v955_v55 = vmul.f32 %v873_v60, %v2740_v1  ;;  %v1115_v24 = vmul.f32 %v2744_v33, %v2599_v40  ;;  %1479 = vmatprep.subr.bf16.mxu0 %v1826_v8  ;;  %v776_v45 = vmul.f32 %v684_v16, %v2608_v23  ;;  %v2854_v3 = vld [vmem:[%s2423_s6 + $0x20] ss:$8 sm:$0x3] }
  0xd3   : > { %1253 = vmatmul.mubr.bf16.vlgmr.msra.gmra.mrb[0].mxu1 %v1159_v7  ;;  %v781_v38 = vsub.f32 %v777_v26, %v779_v20  ;;  %v1118_v25 = vmul.f32 %v1042_v47, %v2712_v44  ;;  %v2830_v28 = vsub.f32 %v2438_v10, %v476_v12  ;;  %v881_v46 = vrot.slane %v1793_v18, %v2435_v5  ;;  %v2859_v26 = vld [vmem:[%s2425_s15 + $0x38] sm:$0xff] }
  0xd4   : > { %1324 = vmatpush1.bf16.xpose.msra.mxu1 %v1816_v54  ;;  %v2826_v31 = vmul.f32 %v692_v14, %v589_v36  ;;  %v957_v54 = vsub.f32 %v953_v58, %v955_v55  ;;  %v960_v40 = vmul.f32 %v874_v49, %v2489_v29  ;;  %v711_v17 = vrot.slane %v2822_v0, %v2431_v2 }
  0xd5   : > { %1427 = vmatprep.subr.bf16.mxu1 %v1823_v51  ;;  %v889_v48 = vmul.f32 %v885_v42, %v781_v38  ;;  %v1120_v33 = vsub.f32 %v1116_v37, %v1118_v25  ;;  %vm560_vm0 = vcmp.ge.f32.partialorder %v2830_v28, 0.0  ;;  %v1053_v52 = vrot.slane %v1801_v4, %v2431_v2 }
  0xd6   : > { %v778_v32 = vmul.f32 %v2826_v31, %v2795_v15  ;;  %v1041_v16 = vmul.f32 %v1034_v9, %v957_v54  ;;  %v2845_v49 = vsel %vm560_vm0, 1.0, %v2169_v30  ;;  %v472_v58 = vrot.slane %v1754_v62, %v2435_v5 }
  0xd7   : > { %v962_v51 = vmul.f32 %v889_v48, %v2773_v41  ;;  %v1313_v57 = vpack.c.bf16 %v1120_v33, %v1120_v33  ;;  %v592_v63 = vsub.f32 %v2783_v53, %v2845_v49  ;;  %v1822_v18 = vcombine.low %v2768_v35, %v2768_v35 }
  0xd8   : > { %v780_v19 = vsub.f32 %v776_v45, %v778_v32  ;;  %v1117_v39 = vmul.f32 %v1041_v16, %v2740_v1  ;;  %v959_v14 = vmul.f32 %v873_v60, %v2605_v11  ;;  %v783_v59 = vmul.f32 %v700_v50, %v2712_v44  ;;  %v1755_v50 = vld [vmem:[%s2417_s14 + $0x11] ss:$8 sm:$0x3] }
  0xd9   : > { %v964_v9 = vsub.f32 %v960_v40, %v962_v51  ;;  %1355 = vmatprep.mubr.bf16.mxu1 %v1313_v57  ;;  %v715_v13 = vmul.f32 %v711_v17, %v592_v63  ;;  %v1049_v53 = vrot.slane %v1801_v4, %v2435_v5  ;;  %v1122_v7 = vmul.f32 %v1042_v47, %v2482_v27  ;;  %v1786_v40 = vld [vmem:[%s2423_s6 + $0x10] ss:$8 sm:$0x3] }
  0xda   : > { %v888_v6 = vmul.f32 %v881_v46, %v780_v19  ;;  %v1119_v62 = vsub.f32 %v1115_v24, %v1117_v39  ;;  %v900_v20 = vrot.slane %v2854_v3, %v2431_v2  ;;  %v2868_v60 = vsub.f32 %v2580_v22, %v472_v58  ;;  %v2879_v24 = vld [vmem:[%s2423_s6 + $0x30] ss:$8 sm:$0x3] }
  0xdb   : > { %v1057_v35 = vmul.f32 %v1053_v52, %v964_v9  ;;  %v785_v42 = vmul.f32 %v715_v13, %v2830_v28  ;;  %v1825_v36 = vcombine.low %v2798_v21, %v2798_v21  ;;  %v1829_v27 = vcombine.high %v2859_v26, %v2859_v26  ;;  %v1756_v9 = vld [vmem:[%s2417_s14 + $0x12] ss:$8 sm:$0x3] }
  0xdc   : > { %v961_v56 = vmul.f32 %v888_v6, %v2795_v15  ;;  %v1312_v8 = vpack.c.bf16 %v1119_v62, %v1119_v62  ;;  %v707_v12 = vrot.slane %v2822_v0, %v2435_v5  ;;  %vm559_vm1 = vcmp.ge.f32.partialorder %v2868_v60, 0.0 }
  0xdd   : > { %v1124_v37 = vmul.f32 %v1057_v35, %v2773_v41  ;;  %v787_v55 = vsub.f32 %v783_v59, %v785_v42  ;;  %v1121_v25 = vmul.f32 %v1041_v16, %v2602_v43  ;;  %v1773_v4 = vsel %vm559_vm1, 1.0, %v2169_v30  ;;  %v1795_v59 = vld [vmem:[%s2423_s6 + $0x21] ss:$8 sm:$0x3] }
  0xde   : > { %v963_v47 = vsub.f32 %v959_v14, %v961_v56  ;;  %1356 = vmatmul.mubr.bf16.vlgmr.msra.gmra.mrb[4].mxu1 %v1312_v8  ;;  %v491_v21 = vrot.slane %v1755_v50, %v2431_v2  ;;  %v966_v46 = vmul.f32 %v889_v48, %v2498_v34  ;;  %v591_v0 = vsub.f32 %v2806_v61, %v1773_v4 }
  0xdf   : > { %v1126_v38 = vsub.f32 %v1122_v7, %v1124_v37  ;;  %1428 = vmatpush1.bf16.xpose.msra.mxu1 %v1822_v18  ;;  %v904_v54 = vmul.f32 %v900_v20, %v787_v55  ;;  %v1068_v32 = vrot.slane %v2879_v24, %v2431_v2  ;;  %v487_v43 = vrot.slane %v1755_v50, %v2435_v5  ;;  %v1787_v37 = vld [vmem:[%s2423_s6 + $0x11] ss:$8 sm:$0x3] }
  0xe0   : > { %v1056_v45 = vmul.f32 %v1049_v53, %v963_v47  ;;  %1531 = vmatprep.subr.bf16.mxu1 %v1829_v27  ;;  %v2892_v17 = vsub.f32 %v2438_v10, %v491_v21  ;;  %v714_v48 = vmul.f32 %v707_v12, %v591_v0  ;;  %v782_v61 = vmul.f32 %v2826_v31, %v2740_v1 }
  0xe1   : > { %v1365_v33 = vpack.c.bf16 %v1126_v38, %v1126_v38  ;;  %v968_v51 = vmul.f32 %v904_v54, %v2830_v28  ;;  %v896_v52 = vrot.slane %v2854_v3, %v2435_v5  ;;  %v1064_v57 = vrot.slane %v2879_v24, %v2435_v5 }
  0xe2   : > { %v1123_v16 = vmul.f32 %v1056_v45, %v2795_v15  ;;  %vm566_vm2 = vcmp.ge.f32.partialorder %v2892_v17, 0.0  ;;  %v726_v19 = vrot.slane %v1786_v40, %v2431_v2  ;;  %v784_v18 = vmul.f32 %v714_v48, %v2868_v60 }
  0xe3   : > { %1407 = vmatprep.mubr.bf16.mxu0 %v1365_v33  ;;  %v970_v63 = vsub.f32 %v966_v46, %v968_v51  ;;  %v1776_v39 = vsel %vm566_vm2, 1.0, %v2169_v30  ;;  %v1128_v31 = vmul.f32 %v1057_v35, %v2489_v29  ;;  %v965_v14 = vmul.f32 %v888_v6, %v2608_v23  ;;  %v1803_v46 = vld [vmem:[%s2423_s6 + $0x31] ss:$8 sm:$0x3] }
  0xe4   : > { %v1125_v58 = vsub.f32 %v1121_v25, %v1123_v16  ;;  %v594_v3 = vsub.f32 %v2845_v49, %v1776_v39  ;;  %v2912_v62 = vsub.f32 %v2580_v22, %v487_v43  ;;  %v786_v56 = vsub.f32 %v782_v61, %v784_v18 }
  0xe5   : > { %v1072_v7 = vmul.f32 %v1068_v32, %v970_v63  ;;  %v722_v42 = vrot.slane %v1786_v40, %v2435_v5  ;;  %v789_v50 = vmul.f32 %v715_v13, %v2773_v41  ;;  %v506_v29 = vrot.slane %v1756_v9, %v2431_v2 }
  0xe6   : > { %v1364_v53 = vpack.c.bf16 %v1125_v58, %v1125_v58  ;;  %v730_v20 = vmul.f32 %v726_v19, %v594_v3  ;;  %vm565_vm3 = vcmp.ge.f32.partialorder %v2912_v62, 0.0  ;;  %v903_v6 = vmul.f32 %v896_v52, %v786_v56 }
  0xe7   : > { %v1130_v49 = vmul.f32 %v1072_v7, %v2830_v28  ;;  %v911_v35 = vrot.slane %v1795_v59, %v2435_v5  ;;  %v1775_v8 = vsel %vm565_vm3, 1.0, %v2169_v30  ;;  %v915_v47 = vrot.slane %v1795_v59, %v2431_v2 }
  0xe8   : > { %1408 = vmatmul.mubr.bf16.vlgmr.msra.gmra.mrb[8].mxu0 %v1364_v53  ;;  %v791_v27 = vmul.f32 %v730_v20, %v2892_v17  ;;  %v593_v13 = vsub.f32 %v1773_v4, %v1775_v8  ;;  %v2925_v12 = vsub.f32 %v2438_v10, %v506_v29  ;;  %v967_v24 = vmul.f32 %v903_v6, %v2868_v60  ;;  %v1804_v29 = vld [vmem:[%s2423_s6 + $0x32] ss:$8 sm:$0x3] }
  0xe9   : > { %1480 = vmatpush1.bf16.xpose.msra.mxu0 %v1825_v36  ;;  %v1132_v55 = vsub.f32 %v1128_v31, %v1130_v49  ;;  %v788_v38 = vmul.f32 %v714_v48, %v2795_v15  ;;  %v502_v25 = vrot.slane %v1756_v9, %v2435_v5  ;;  %v741_v36 = vrot.slane %v1787_v37, %v2431_v2  ;;  %v1796_v48 = vld [vmem:[%s2423_s6 + $0x22] ss:$8 sm:$0x3] }
  0xea   : > { %v793_v21 = vsub.f32 %v789_v50, %v791_v27  ;;  %v729_v0 = vmul.f32 %v722_v42, %v593_v13  ;;  %vm572_vm4 = vcmp.ge.f32.partialorder %v2925_v12, 0.0  ;;  %v969_v4 = vsub.f32 %v965_v14, %v967_v24 }
  0xeb   : > { %v1417_v40 = vpack.c.bf16 %v1132_v55, %v1132_v55  ;;  %v1127_v10 = vmul.f32 %v1056_v45, %v2605_v11  ;;  %v1778_v33 = vsel %vm572_vm4, 1.0, %v2169_v30  ;;  %v972_v43 = vmul.f32 %v904_v54, %v2712_v44 }
  0xec   : > { %v919_v32 = vmul.f32 %v915_v47, %v793_v21  ;;  %v790_v16 = vmul.f32 %v729_v0, %v2912_v62  ;;  %v596_v51 = vsub.f32 %v1776_v39, %v1778_v33  ;;  %v1071_v61 = vmul.f32 %v1064_v57, %v969_v4 }
  0xed   : > { %1459 = vmatprep.mubr.bf16.mxu1 %v1417_v40  ;;  %v1083_v52 = vrot.slane %v1803_v46, %v2431_v2  ;;  %v737_v19 = vrot.slane %v1787_v37, %v2435_v5  ;;  %v509_v58 = vsub.f32 %v2580_v22, %v502_v25  ;;  %v795_v18 = vmul.f32 %v730_v20, %v2830_v28 }
  0xee   : > { %v974_v63 = vmul.f32 %v919_v32, %v2892_v17  ;;  %v792_v11 = vsub.f32 %v788_v38, %v790_v16  ;;  %v745_v45 = vmul.f32 %v741_v36, %v596_v51  ;;  %v1129_v54 = vmul.f32 %v1071_v61, %v2868_v60 }
  0xef   : > { %v971_v39 = vmul.f32 %v903_v6, %v2740_v1  ;;  %v930_v9 = vrot.slane %v1796_v48, %v2431_v2  ;;  %vm571_vm5 = vcmp.ge.f32.partialorder %v509_v58, 0.0  ;;  %v1828_v3 = vcombine.low %v2859_v26, %v2859_v26 }
  0xf0   : > { %v976_v57 = vsub.f32 %v972_v43, %v974_v63  ;;  %v918_v31 = vmul.f32 %v911_v35, %v792_v11  ;;  %v797_v14 = vmul.f32 %v745_v45, %v2925_v12  ;;  %v1777_v22 = vsel %vm571_vm5, 1.0, %v2169_v30 }
  0xf1   : > { %v1131_v59 = vsub.f32 %v1127_v10, %v1129_v54  ;;  %v1079_v28 = vrot.slane %v1803_v46, %v2435_v5  ;;  %v595_v53 = vsub.f32 %v1775_v8, %v1777_v22  ;;  %v1134_v42 = vmul.f32 %v1072_v7, %v2498_v34 }
  0xf2   : > { %v1087_v56 = vmul.f32 %v1083_v52, %v976_v57  ;;  %v973_v20 = vmul.f32 %v918_v31, %v2912_v62  ;;  %v799_v50 = vsub.f32 %v795_v18, %v797_v14  ;;  %v794_v35 = vmul.f32 %v729_v0, %v2868_v60 }
  0xf3   : > { %v1416_v49 = vpack.c.bf16 %v1131_v59, %v1131_v59  ;;  %v744_v6 = vmul.f32 %v737_v19, %v595_v53  ;;  %v978_v26 = vmul.f32 %v919_v32, %v2773_v41  ;;  %v926_v8 = vrot.slane %v1796_v48, %v2435_v5 }
  0xf4   : > { %v1136_v30 = vmul.f32 %v1087_v56, %v2892_v17  ;;  %v975_v37 = vsub.f32 %v971_v39, %v973_v20  ;;  %v934_v27 = vmul.f32 %v930_v9, %v799_v50  ;;  %v1098_v47 = vrot.slane %v1804_v29, %v2431_v2 }
  0xf5   : > { %1460 = vmatmul.mubr.bf16.vlgmr.msra.gmra.mrb[8].mxu1 %v1416_v49  ;;  %v796_v34 = vmul.f32 %v744_v6, %v509_v58  ;;  %v1133_v55 = vmul.f32 %v1071_v61, %v2608_v23  ;;  %v977_v41 = vmul.f32 %v918_v31, %v2795_v15  ;;  %v1140_v2 = vmul.f32 %v1087_v56, %v2712_v44 }
  0xf6   : > { %1532 = vmatpush1.bf16.xpose.msra.mxu1 %v1828_v3  ;;  %v1138_v7 = vsub.f32 %v1134_v42, %v1136_v30  ;;  %v1086_v13 = vmul.f32 %v1079_v28, %v975_v37  ;;  %v980_v24 = vmul.f32 %v934_v27, %v2925_v12  ;;  %v1094_v36 = vrot.slane %v1804_v29, %v2435_v5 }
  0xf7   : > { %v798_v60 = vsub.f32 %v794_v35, %v796_v34  ;;  %vm1576_vm6 = vcmask (!%p1830_p9), 64512  }
  0xf8   : > { %v1469_v38 = vpack.c.bf16 %v1138_v7, %v1138_v7  ;;  %v1135_v17 = vmul.f32 %v1086_v13, %v2912_v62  ;;  %v982_v25 = vsub.f32 %v978_v26, %v980_v24  ;;  %v1139_v62 = vmul.f32 %v1086_v13, %v2740_v1 }
  0xf9   : > { %v933_v21 = vmul.f32 %v926_v8, %v798_v60  ;;  %v2170_v7 = vmov (!%p1830_p9), 0.0  }
  0xfa   : > { %1511 = vmatprep.mubr.bf16.mxu0 %v1469_v38  ;;  %v1137_v46 = vsub.f32 %v1133_v55, %v1135_v17  ;;  %v1102_v0 = vmul.f32 %v1098_v47, %v982_v25  ;;  %1577 = vst.msk [vmem:[#allocation2] sm:$0xff] (!%p1830_p9), %vm1576_vm6, %v2170_v7 }
  0xfb   : > { %v979_v40 = vmul.f32 %v933_v21, %v509_v58 }
  0xfc   : > { %v1468_v4 = vpack.c.bf16 %v1137_v46, %v1137_v46  ;;  %v1142_v23 = vmul.f32 %v1102_v0, %v2925_v12 }
  0xfd   : > { %v981_v10 = vsub.f32 %v977_v41, %v979_v40 }
  0xfe   : > { %1512 = vmatmul.mubr.bf16.vlgmr.msra.gmra.mrb[12].mxu0 %v1468_v4  ;;  %v1144_v33 = vsub.f32 %v1140_v2, %v1142_v23 }
  0xff   : > { %v1101_v32 = vmul.f32 %v1094_v36, %v981_v10 }
 0x100   : > { %v1521_v43 = vpack.c.bf16 %v1144_v33, %v1144_v33 }
 0x101   : > { %v1141_v16 = vmul.f32 %v1101_v32, %v509_v58 }
 0x102   : > { %1563 = vmatprep.mubr.bf16.mxu1 %v1521_v43 }
 0x103   : > { %v1143_v15 = vsub.f32 %v1139_v62, %v1141_v16 }
 0x105   : > { %v1520_v51 = vpack.c.bf16 %v1143_v15, %v1143_v15 }
 0x107   : > { %1564 = vmatmul.mubr.bf16.vlgmr.msra.gmra.mrb[12].mxu1 %v1520_v51 }
 0x198   : > { %v1207_v48 = vpop.f32.mrb[0].mxu0 }
 0x199   : > { %v1209_v44 = vpop.f32.mrb[1].mxu0 }
 0x19a   : > { %v1210_v61 = vpop.f32.mrb[2].mxu0 }
 0x19b   : > { %v1211_v5 = vpop.f32.mrb[3].mxu0 }
 0x1a1   : > { %v1305_v52 = vpop.f32.mrb[4].mxu0 }
 0x1a2   : > { %v1307_v19 = vpop.f32.mrb[5].mxu0 }
 0x1a3   : > { %v1308_v63 = vpop.f32.mrb[6].mxu0 }
 0x1a4   : > { %v1309_v12 = vpop.f32.mrb[7].mxu0 }
 0x1a6   : > { %v1254_v11 = vpop.f32.mrb[0].mxu1 }
 0x1a7   : > { %v1255_v45 = vadd.f32 %v1254_v11, %v1207_v48  ;;  %v1256_v18 = vpop.f32.mrb[1].mxu1 }
 0x1a8   : > { %v1257_v54 = vpop.f32.mrb[2].mxu1 }
 0x1a9   : > { %v1258_v39 = vpop.f32.mrb[3].mxu1  ;;  %v1311_v1 = vadd.f32 %v1305_v52, %v1255_v45 }
 0x1b1   : > { %v1357_v9 = vpop.f32.mrb[4].mxu1 }
 0x1b2   : > { %v1363_v58 = vadd.f32 %v1357_v9, %v1311_v1  ;;  %v1359_v57 = vpop.f32.mrb[5].mxu1 }
 0x1b3   : > { %v1360_v31 = vpop.f32.mrb[6].mxu1 }
 0x1b4   : > { %v1361_v14 = vpop.f32.mrb[7].mxu1 }
 0x1bb   : > { %v1409_v22 = vpop.f32.mrb[8].mxu0 }
 0x1bc   : > { %v1415_v3 = vadd.f32 %v1409_v22, %v1363_v58  ;;  %v1411_v59 = vpop.f32.mrb[9].mxu0 }
 0x1bd   : > { %v1412_v28 = vpop.f32.mrb[10].mxu0 }
 0x1be   : > { %v1413_v53 = vpop.f32.mrb[11].mxu0 }
 0x1c8   : > { %v1461_v56 = vpop.f32.mrb[8].mxu1 }
 0x1c9   : > { %v1467_v42 = vadd.f32 %v1461_v56, %v1415_v3  ;;  %v1463_v20 = vpop.f32.mrb[9].mxu1 }
 0x1ca   : > { %v1464_v50 = vpop.f32.mrb[10].mxu1 }
 0x1cb   : > { %v1465_v29 = vpop.f32.mrb[11].mxu1 }
 0x1d1   : > { %v1513_v49 = vpop.f32.mrb[12].mxu0 }
 0x1d2   : > { %v1519_v6 = vadd.f32 %v1513_v49, %v1467_v42  ;;  %v1515_v35 = vpop.f32.mrb[13].mxu0 }
 0x1d3   : > { %v1516_v30 = vpop.f32.mrb[14].mxu0 }
 0x1d4   : > { %v1517_v37 = vpop.f32.mrb[15].mxu0 }
 0x1d7   : > { %1575 = sbr.rel (%p1830_p9) target bundleno = 478 (0x1de), region = 56 }
 0x1da   : > { %v1565_v27 = vpop.f32.mrb[12].mxu1 }
 0x1db   : > { %v1571_v26 = vadd.f32 %v1565_v27, %v1519_v6  ;;  %v1567_v8 = vpop.f32.mrb[13].mxu1 }
 0x1dc   : > { %v1568_v47 = vpop.f32.mrb[14].mxu1 }
 0x1dd   : > { %v1569_v34 = vpop.f32.mrb[15].mxu1 }
 0x1de PF: > { %v1578_v13 = vld [vmem:[#allocation2] sm:$0xff]  ;;  %vm1580_vm7 = vcmask 64512   ;;  %p1831_p4 = scmp.ne.s32.totalorder %s2149_s18, 2 }
 0x1df   : > { %v1579_v55 = vadd.f32 %v1578_v13, %v1571_v26 }
 0x1e0   : > { %1585 = sbr.rel (%p1831_p4) target bundleno = 490 (0x1ea), region = 60 }
 0x1e1   : > { %1581 = vst.msk [vmem:[#allocation2] sm:$0xff] %vm1580_vm7, %v1579_v55 }
 0x1e8   : > { %v1586_v24 = vld [vmem:[#allocation2] sm:$0xff] }
 0x1e9   : > { %1587 = vst.msk [vmem:[#allocation11] sm:$0xff] %vm1580_vm7, %v1586_v24 }
 0x1ea PF: > { %p1866_p6 = scmp.eq.s32.totalorder %s2226_s21, 2  ;;  %s2171_s25 = smov [#allocation11]  }
 0x1eb   : > { %s1597_s5 = sshll.u32 %s2171_s25, 4  ;;  %s1598_s5 = int_to_ptr.vmem [resolvable:$true] %s1597_s5 }
 0x1ec   : > { %s2069_s30 = scalar_lea.vmem %s1598_s5, 128  ;;  %p2076_p12 = scmp.lt.s32.totalorder %s1598_s5, %s1598_s5 }
 0x1ed   : > { %p2070_p8 = scmp.ne.s32.totalorder %s1598_s5, %s2069_s30  ;;  %p2077_p0 = scmp.lt.s32.totalorder %s2069_s30, %s2069_s30 }
 0x1ef   : > { %p2071_p2 = pnand %p2070_p8, %p1866_p6  ;;  %p2078_p10 = por %p2077_p0, %p2076_p12 }
 0x1f1   : > { %p2072_p5 = pneg %p2071_p2 }
 0x1f3   : > { %p2079_p1 = pnand %p2078_p10, %p2072_p5 }
 0x1f5   : > { %2082 = shalt.err (!%p2079_p1)
}
 0x1f6   : > { %s2083_s28 = scalar_lea.hbm %s3014_s4, 128 }
 0x1f7   : > { %p2084_p13 = scmp.ne.s32.totalorder %s3014_s4, %s2083_s28  ;;  %p2089_p7 = scmp.lt.u32.totalorder %s2083_s28, %s3014_s4 }
 0x1f9   : > { %p2085_p3 = pnand %p2084_p13, %p1866_p6 }
 0x1fb   : > { %p2086_p11 = pneg %p2085_p3 }
 0x1fd   : > { %p2091_p9 = pnand %p2089_p7, %p2086_p11 }
 0x1ff   : > { %2094 = shalt.err (!%p2091_p9)
}
 0x200   : > { %1849 = dma.vmem_to_hbm [thread:$0]  (%p1866_p6), %s1598_s5, 128, %s3014_s4, [#allocation5]  }
 0x201   : > { %2132 = dma.done.wait (%p1866_p6), [#allocation5], 128  }
 0x202   : > { %2134 = vsyncadd (%p1866_p6), [#allocation5], 4294967168 }
 0x203 PF: > { %s24_s20 = sadd.s32 1, %s2157_s20   ;;  %s3034_s10 = sld [smem:[#allocation16_spill]] }
 0x204   : > { %p21_p4 = scmp.ge.s32.totalorder %s24_s20, 5   ;;  %s3035_s15 = smov %s2141_s16 }
 0x205   : > { %s3036_s16 = smov %s2145_s17  ;;  %s3037_s17 = smov %s2245_s26 }
 0x206   : > { %s3038_s18 = smov %s2153_s19  ;;  %23 = sbr.rel (!%p21_p4) target bundleno = 11 (0xb), region = 162 }
 0x209   : > { %s3039_s19 = smov %s3034_s10 }
 0x20d   :  { %1610 = vsyncpa [#allocation4], 1 }
 0x20e   :  { %1612 = vsyncpa [#allocation4 + $0x1], 1 }
 0x20f   :  { %1613 = vsyncpa [#allocation7], 1 }
 0x210   :  { %1615 = vsyncpa [#allocation7 + $0x1], 1 }
 0x211   :  { %1616 = vsyncpa [#allocation10], 1 }
 0x212   :  { %1618 = vsyncpa [#allocation10 + $0x1], 1 }
 0x213   :  { %1619 = vsyncpa [#allocation5], 1 }
 0x214   :  { %1621 = vsyncpa [#allocation5 + $0x1], 1 }

</bundles_post_ra>
